<compile_context>
chip_gen: v6e
topology: v6e:2x2x1
jax: 0.10.0
libtpu: 0.0.40
codegen_flags: <defaults>
</compile_context>

<pallas_src>
import jax
import jax.numpy as jnp
from jax import lax
from jax.experimental import pallas as pl
from jax.experimental.pallas import tpu as pltpu

D = 512  # hidden size fixed by the module (Linear(512, 512))


def mlp_relu_kernel(x_ref, w1_ref, b1_ref, w2_ref, b2_ref, w3_ref, b3_ref, o_ref):
    # emb1: bf16 x bf16 MXU matmul, f32 accumulation, then f32 bias + ReLU.
    h = jnp.dot(x_ref[...], w1_ref[...], preferred_element_type=jnp.float32)
    h = jnp.maximum(h + b1_ref[...], 0.0)
    # emb2 / emb3: keep the MXU on its native bf16 path — round-trip the activations through
    # bf16 instead of upcasting the resident weights to f32 every grid step (the old f32 x f32
    # matmuls decompose into multiple bf16 passes and the per-step cast wasted VPU slots + VMEM).
    h = jnp.dot(h.astype(jnp.bfloat16), w2_ref[...], preferred_element_type=jnp.float32)
    h = jnp.maximum(h + b2_ref[...], 0.0)
    h = jnp.dot(h.astype(jnp.bfloat16), w3_ref[...], preferred_element_type=jnp.float32)
    h = h + b3_ref[...]
    # F.normalize(x, dim=1): row / max(||row||_2, 1e-12) == row * rsqrt(max(||row||^2, 1e-24)).
    # Single EUP rsqrt (free slot) instead of sqrt + divide.
    ss = jnp.sum(h * h, axis=1, keepdims=True)
    inv = lax.rsqrt(jnp.maximum(ss, 1e-24))
    o_ref[...] = (h * inv).astype(o_ref.dtype)


def _round_up(n, m):
    return ((n + m - 1) // m) * m


def _choose_tile(B, tb):
    """Pick the batch tile.

    - Round to a multiple of 16 (bf16 (16,128) sublane tile) so layouts stay clean.
    - Cap at `tb` (default 2048) so the tile budget fits every generation.
    - If the whole batch would land in a single grid step but is big enough to split
      usefully (>= 256 rows), halve the tile so the "parallel" grid axis gives both of
      v7x's TensorCores work (no-op on v5e/v6e, which have a single TC).
    """
    B16 = _round_up(max(B, 16), 16)
    TB = min(tb, B16)
    if TB == B16 and B16 >= 256:
        TB = _round_up(pl.cdiv(B16, 2), 16)
    return TB


def mlp_relu_forward(x, params, *, tb=2048):
    """x: (B, 512) float32. params: bf16 weights stored (in, out) + f32 biases (1, out)."""
    w1, b1, w2, b2, w3, b3 = params
    B = x.shape[0]

    TB = _choose_tile(B, tb)
    Bp = _round_up(B, TB)

    xp = x.astype(jnp.bfloat16)  # halve x HBM bytes; all matmuls are native bf16
    if Bp != B:
        xp = jnp.pad(xp, ((0, Bp - B), (0, 0)))

    # Weights/biases never change block index -> keep them resident and SINGLE-buffered
    # (double-buffering constant blocks would waste ~1.5 MiB of VMEM).
    weight_spec = pl.BlockSpec((D, D), lambda i: (0, 0), pipeline_mode=pl.Buffered(1))
    bias_spec = pl.BlockSpec((1, D), lambda i: (0, 0), pipeline_mode=pl.Buffered(1))

    # VMEM budget at TB=2048 (worst case):
    #   x tile   bf16 2048x512: 2 MiB  x 2 buffers = 4 MiB
    #   out tile f32  2048x512: 4 MiB  x 2 buffers = 8 MiB
    #   resident bf16 weights (single-buffered):     1.5 MiB
    #   in-kernel f32/bf16 activation temps:        ~10-14 MiB
    #   total ~28 MiB  -> fits v7x's 64 MiB physical VMEM and the raised scoped limit below.
    cost = pl.CostEstimate(
        flops=3 * 2 * Bp * D * D,
        transcendentals=Bp,  # one rsqrt per row
        bytes_accessed=3 * D * D * 2 + 3 * D * 4 + Bp * D * 2 + Bp * D * 4,
    )

    out = pl.pallas_call(
        mlp_relu_kernel,
        out_shape=jax.ShapeDtypeStruct((Bp, D), jnp.float32),
        grid=(Bp // TB,),
        in_specs=[
            pl.BlockSpec((TB, D), lambda i: (i, 0)),  # x: tiled over batch, double-buffered
            weight_spec, bias_spec,
            weight_spec, bias_spec,
            weight_spec, bias_spec,
        ],
        out_specs=pl.BlockSpec((TB, D), lambda i: (i, 0)),
        compiler_params=pltpu.CompilerParams(
            # Independent batch tiles: shard across v7x's 2 TensorCores (no-op on v5e/v6e).
            dimension_semantics=("parallel",),
            # Default scoped VMEM is 16/32 MiB (v5e / v6e+v7x); raise it so TB=2048 tiles fit.
            vmem_limit_bytes=64 << 20,
        ),
        cost_estimate=cost,
    )(xp, w1, b1, w2, b2, w3, b3)
    return out[:B] if Bp != B else out


def init_params(key):
    # Deterministic init mimicking PyTorch Linear default: U(-1/sqrt(fan_in), 1/sqrt(fan_in)).
    # Weights stored as (in, out) in bf16 (streamed at half the bytes); biases stay f32.
    bound = 1.0 / jnp.sqrt(jnp.float32(D))
    keys = jax.random.split(key, 6)

    def w(k):
        return jax.random.uniform(k, (D, D), jnp.float32, -bound, bound).astype(jnp.bfloat16)

    def b(k):
        return jax.random.uniform(k, (1, D), jnp.float32, -bound, bound)

    return (w(keys[0]), b(keys[1]), w(keys[2]), b(keys[3]), w(keys[4]), b(keys[5]))


def reference_forward(x, params):
    # Mirrors the kernel's precision path: bf16 operands into every matmul, f32 accumulation,
    # f32 bias/ReLU/normalize. (The bf16 activation round-trip is the accepted precision
    # tradeoff for keeping all matmuls on the MXU's native bf16 path.)
    w1, b1, w2, b2, w3, b3 = params
    w1f, w2f, w3f = (w.astype(jnp.float32) for w in (w1, w2, w3))
    h = x.astype(jnp.bfloat16).astype(jnp.float32)
    h = jnp.maximum(h @ w1f + b1, 0.0)
    h = jnp.maximum(h.astype(jnp.bfloat16).astype(jnp.float32) @ w2f + b2, 0.0)
    h = h.astype(jnp.bfloat16).astype(jnp.float32) @ w3f + b3
    ss = jnp.sum(h * h, axis=1, keepdims=True)
    return h * lax.rsqrt(jnp.maximum(ss, 1e-24))


if __name__ == "__main__":
    key = jax.random.PRNGKey(0)
    k_x, k_p = jax.random.split(key)
    B = 8  # small batch
    x = jax.random.normal(k_x, (B, D), jnp.float32)
    params = init_params(k_p)

    out = mlp_relu_forward(x, params)
    out = jax.block_until_ready(out)

    ref = reference_forward(x, params)
    assert out.shape == (B, D)
    # Reference mirrors the kernel's bf16-matmul precision; residual diff is f32
    # accumulation-order noise only.
    assert jnp.allclose(out, ref, atol=1e-3, rtol=1e-3), "mismatch vs reference"
    # Rows should be unit-norm after F.normalize(dim=1).
    assert jnp.allclose(jnp.linalg.norm(out, axis=1), 1.0, atol=1e-4)

    print("KERNEL_OK")
</pallas_src>

<mosaic_0001>
module attributes {stable_mosaic.version = 11 : i64} {
  func.func @mlp_relu_kernel(%arg0: i32, %arg1: memref<16x512xbf16, #tpu.memory_space<vmem>>, %arg2: memref<512x512xbf16, #tpu.memory_space<vmem>>, %arg3: memref<1x512xf32, #tpu.memory_space<vmem>>, %arg4: memref<512x512xbf16, #tpu.memory_space<vmem>>, %arg5: memref<1x512xf32, #tpu.memory_space<vmem>>, %arg6: memref<512x512xbf16, #tpu.memory_space<vmem>>, %arg7: memref<1x512xf32, #tpu.memory_space<vmem>>, %arg8: memref<16x512xf32, #tpu.memory_space<vmem>>) attributes {dimension_semantics = [#tpu.dimension_semantics<parallel>], iteration_bounds = array<i64: 1>, scalar_prefetch = 0 : i64, scratch_operands = 0 : i64, tpu.core_type = #tpu.core_type<tc>, window_params = [{transform_indices = @transform_0, window_bounds = array<i64: 16, 512>}, {pipeline_mode = #tpu.pipeline_mode<synchronous>, transform_indices = @transform_1, window_bounds = array<i64: 512, 512>}, {pipeline_mode = #tpu.pipeline_mode<synchronous>, transform_indices = @transform_2, window_bounds = array<i64: 1, 512>}, {pipeline_mode = #tpu.pipeline_mode<synchronous>, transform_indices = @transform_3, window_bounds = array<i64: 512, 512>}, {pipeline_mode = #tpu.pipeline_mode<synchronous>, transform_indices = @transform_4, window_bounds = array<i64: 1, 512>}, {pipeline_mode = #tpu.pipeline_mode<synchronous>, transform_indices = @transform_5, window_bounds = array<i64: 512, 512>}, {pipeline_mode = #tpu.pipeline_mode<synchronous>, transform_indices = @transform_6, window_bounds = array<i64: 1, 512>}, {transform_indices = @transform_7, window_bounds = array<i64: 16, 512>}]} {
    %c0 = arith.constant 0 : index
    %c0_0 = arith.constant 0 : index
    %0 = vector.load %arg1[%c0, %c0_0] : memref<16x512xbf16, #tpu.memory_space<vmem>>, vector<16x512xbf16>
    %c0_1 = arith.constant 0 : index
    %c0_2 = arith.constant 0 : index
    %1 = vector.load %arg2[%c0_1, %c0_2] : memref<512x512xbf16, #tpu.memory_space<vmem>>, vector<512x512xbf16>
    %cst = arith.constant dense<0.000000e+00> : vector<16x512xf32>
    %2 = tpu.matmul %0, %1, %cst {dimension_numbers = #tpu.dot_dimension_numbers<[1], [0], [0], [1], [0, 0, 1, 1], [], []>} : vector<16x512xbf16>, vector<512x512xbf16>, vector<16x512xf32> -> vector<16x512xf32>
    %c0_3 = arith.constant 0 : index
    %c0_4 = arith.constant 0 : index
    %3 = vector.load %arg3[%c0_3, %c0_4] : memref<1x512xf32, #tpu.memory_space<vmem>>, vector<1x512xf32>
    %4 = vector.broadcast %3 : vector<1x512xf32> to vector<16x512xf32>
    %5 = arith.addf %2, %4 : vector<16x512xf32>
    %cst_5 = arith.constant 0.000000e+00 : f32
    %6 = vector.broadcast %cst_5 : f32 to vector<16x512xf32>
    %7 = arith.maximumf %5, %6 : vector<16x512xf32>
    %8 = arith.truncf %7 : vector<16x512xf32> to vector<16x512xbf16>
    %c0_6 = arith.constant 0 : index
    %c0_7 = arith.constant 0 : index
    %9 = vector.load %arg4[%c0_6, %c0_7] : memref<512x512xbf16, #tpu.memory_space<vmem>>, vector<512x512xbf16>
    %cst_8 = arith.constant dense<0.000000e+00> : vector<16x512xf32>
    %10 = tpu.matmul %8, %9, %cst_8 {dimension_numbers = #tpu.dot_dimension_numbers<[1], [0], [0], [1], [0, 0, 1, 1], [], []>} : vector<16x512xbf16>, vector<512x512xbf16>, vector<16x512xf32> -> vector<16x512xf32>
    %c0_9 = arith.constant 0 : index
    %c0_10 = arith.constant 0 : index
    %11 = vector.load %arg5[%c0_9, %c0_10] : memref<1x512xf32, #tpu.memory_space<vmem>>, vector<1x512xf32>
    %12 = vector.broadcast %11 : vector<1x512xf32> to vector<16x512xf32>
    %13 = arith.addf %10, %12 : vector<16x512xf32>
    %cst_11 = arith.constant 0.000000e+00 : f32
    %14 = vector.broadcast %cst_11 : f32 to vector<16x512xf32>
    %15 = arith.maximumf %13, %14 : vector<16x512xf32>
    %16 = arith.truncf %15 : vector<16x512xf32> to vector<16x512xbf16>
    %c0_12 = arith.constant 0 : index
    %c0_13 = arith.constant 0 : index
    %17 = vector.load %arg6[%c0_12, %c0_13] : memref<512x512xbf16, #tpu.memory_space<vmem>>, vector<512x512xbf16>
    %cst_14 = arith.constant dense<0.000000e+00> : vector<16x512xf32>
    %18 = tpu.matmul %16, %17, %cst_14 {dimension_numbers = #tpu.dot_dimension_numbers<[1], [0], [0], [1], [0, 0, 1, 1], [], []>} : vector<16x512xbf16>, vector<512x512xbf16>, vector<16x512xf32> -> vector<16x512xf32>
    %c0_15 = arith.constant 0 : index
    %c0_16 = arith.constant 0 : index
    %19 = vector.load %arg7[%c0_15, %c0_16] : memref<1x512xf32, #tpu.memory_space<vmem>>, vector<1x512xf32>
    %20 = vector.broadcast %19 : vector<1x512xf32> to vector<16x512xf32>
    %21 = arith.addf %18, %20 : vector<16x512xf32>
    %22 = arith.mulf %21, %21 : vector<16x512xf32>
    %cst_17 = arith.constant dense<0.000000e+00> : vector<16xf32>
    %23 = vector.multi_reduction <add>, %22, %cst_17 [1] : vector<16x512xf32> to vector<16xf32>
    %24 = vector.shape_cast %23 : vector<16xf32> to vector<16x1xf32>
    %cst_18 = arith.constant 1.000000e-24 : f32
    %25 = vector.broadcast %cst_18 : f32 to vector<16x1xf32>
    %26 = arith.maximumf %24, %25 : vector<16x1xf32>
    %27 = math.rsqrt %26 : vector<16x1xf32>
    %28 = vector.broadcast %27 : vector<16x1xf32> to vector<16x512xf32>
    %29 = arith.mulf %21, %28 : vector<16x512xf32>
    %c0_19 = arith.constant 0 : index
    %c0_20 = arith.constant 0 : index
    %30 = vector.load %arg8[%c0_19, %c0_20] : memref<16x512xf32, #tpu.memory_space<vmem>>, vector<16x512xf32>
    tpu.vector_store %arg8[%c0_19, %c0_20], %29 {strides = array<i32>} : memref<16x512xf32, #tpu.memory_space<vmem>>, vector<16x512xf32>,
    return
  }
  func.func @transform_0(%arg0: i32) -> (i32, i32) {
    %c0_i32 = arith.constant 0 : i32
    %c0_i32_0 = arith.constant 0 : i32
    return %arg0, %c0_i32 : i32, i32
  }
  func.func @transform_1(%arg0: i32) -> (i32, i32) {
    %c0_i32 = arith.constant 0 : i32
    %c0_i32_0 = arith.constant 0 : i32
    %c0_i32_1 = arith.constant 0 : i32
    return %c0_i32, %c0_i32_0 : i32, i32
  }
  func.func @transform_2(%arg0: i32) -> (i32, i32) {
    %c0_i32 = arith.constant 0 : i32
    %c0_i32_0 = arith.constant 0 : i32
    %c0_i32_1 = arith.constant 0 : i32
    return %c0_i32, %c0_i32_0 : i32, i32
  }
  func.func @transform_3(%arg0: i32) -> (i32, i32) {
    %c0_i32 = arith.constant 0 : i32
    %c0_i32_0 = arith.constant 0 : i32
    %c0_i32_1 = arith.constant 0 : i32
    return %c0_i32, %c0_i32_0 : i32, i32
  }
  func.func @transform_4(%arg0: i32) -> (i32, i32) {
    %c0_i32 = arith.constant 0 : i32
    %c0_i32_0 = arith.constant 0 : i32
    %c0_i32_1 = arith.constant 0 : i32
    return %c0_i32, %c0_i32_0 : i32, i32
  }
  func.func @transform_5(%arg0: i32) -> (i32, i32) {
    %c0_i32 = arith.constant 0 : i32
    %c0_i32_0 = arith.constant 0 : i32
    %c0_i32_1 = arith.constant 0 : i32
    return %c0_i32, %c0_i32_0 : i32, i32
  }
  func.func @transform_6(%arg0: i32) -> (i32, i32) {
    %c0_i32 = arith.constant 0 : i32
    %c0_i32_0 = arith.constant 0 : i32
    %c0_i32_1 = arith.constant 0 : i32
    return %c0_i32, %c0_i32_0 : i32, i32
  }
  func.func @transform_7(%arg0: i32) -> (i32, i32) {
    %c0_i32 = arith.constant 0 : i32
    %c0_i32_0 = arith.constant 0 : i32
    return %arg0, %c0_i32 : i32, i32
  }
}

</mosaic_0001>

<bundles_post_ra>
// kernel: tpu_custom_call.1
= control target key start
LH: loop header
LB: loop body
LE: loop exit
PB: predicated region body
PF: predicated region fallthrough
CT: control target
= control target key end

     0   :  { %12 = vsyncpa [#allocation3], 0  ;;  %s4344_s0 = inlined_call_operand.hbm [shape: bf16[16,512], index: 0, kind: input, shape index: {}]   ;;  %s4345_s1 = inlined_call_operand.hbm [shape: bf16[512,512], index: 1, kind: input, shape index: {}]   ;;  %s4346_s2 = inlined_call_operand.hbm [shape: f32[1,512], index: 2, kind: input, shape index: {}]   ;;  %s4347_s3 = inlined_call_operand.hbm [shape: bf16[512,512], index: 3, kind: input, shape index: {}]   ;;  %s4348_s4 = inlined_call_operand.vmem [shape: f32[1,512], index: 4, kind: input, shape index: {}]   ;;  %s4349_s5 = inlined_call_operand.hbm [shape: bf16[512,512], index: 5, kind: input, shape index: {}]   ;;  %s4350_s6 = inlined_call_operand.vmem [shape: f32[1,512], index: 6, kind: input, shape index: {}]   ;;  %s4351_s7 = inlined_call_operand.hbm [shape: f32[16,512], index: 7, kind: output, shape index: {}]  }
   0x1   :  { %13 = vsyncpa [#allocation6], 0 }
   0x2   :  { %14 = vsyncpa [#allocation9], 0 }
   0x3   :  { %15 = vsyncpa [#allocation4], 0  ;;  %s4196_s24 = smov [#allocation5]   ;;  %s4197_s26 = smov [#allocation8]  }
   0x4   :  { %s33_s25 = sshll.u32 %s4196_s24, 4  ;;  %s55_s27 = sshll.u32 %s4197_s26, 4  ;;  %s34_s25 = int_to_ptr.vmem [resolvable:$true] %s33_s25  ;;  %s56_s27 = int_to_ptr.vmem [resolvable:$true] %s55_s27 }
   0x5   :  { %s4076_s28 = scalar_lea.vmem %s34_s25, 16384  ;;  %p4081_p1 = scmp.lt.s32.totalorder %s34_s25, %s34_s25 }
   0x6   :  { %p4077_p0 = scmp.ne.s32.totalorder %s34_s25, %s4076_s28  ;;  %p4082_p2 = scmp.lt.s32.totalorder %s4076_s28, %s4076_s28 }
   0x8   :  { %p4083_p3 = por %p4082_p2, %p4081_p1 }
   0xa   :  { %p4084_p4 = pnand %p4083_p3, %p4077_p0 }
   0xc   :  { %4087 = shalt.err (!%p4084_p4)
}
   0xd   :  { %s4198_s29 = smov 256   ;;  %s4199_s30 = smov 16  }
   0xe   :  { %39 = dma.hbm_to_vmem [thread:$0]  %s4345_s1, 16384, %s34_s25, [#allocation6], %s4198_s29, %s4198_s29, %s4199_s30  }
   0xf   :  { %s4096_s10 = scalar_lea.vmem %s56_s27, 16384  ;;  %p4101_p6 = scmp.lt.s32.totalorder %s56_s27, %s56_s27 }
  0x10   :  { %p4097_p5 = scmp.ne.s32.totalorder %s56_s27, %s4096_s10  ;;  %p4102_p7 = scmp.lt.s32.totalorder %s4096_s10, %s4096_s10 }
  0x12   :  { %p4103_p8 = por %p4102_p7, %p4101_p6 }
  0x14   :  { %p4104_p9 = pnand %p4103_p8, %p4097_p5 }
  0x16   :  { %4107 = shalt.err (!%p4104_p9)
}
  0x17   :  { %61 = dma.hbm_to_vmem [thread:$0]  %s4347_s3, 16384, %s56_s27, [#allocation9], %s4198_s29, %s4198_s29, %s4199_s30  }
  0x18   :  { %s4200_s13 = smov [#allocation2]   ;;  %s4201_s15 = smov [#allocation7]  }
  0x19   :  { %s21_s14 = sshll.u32 %s4200_s13, 4  ;;  %s46_s16 = sshll.u32 %s4201_s15, 4  ;;  %s22_s14 = int_to_ptr.vmem [resolvable:$true] %s21_s14  ;;  %s47_s16 = int_to_ptr.vmem [resolvable:$true] %s46_s16 }
  0x1a   :  { %s4116_s1 = scalar_lea.vmem %s22_s14, 512  ;;  %p4121_p11 = scmp.lt.s32.totalorder %s22_s14, %s22_s14 }
  0x1b   :  { %p4117_p10 = scmp.ne.s32.totalorder %s22_s14, %s4116_s1  ;;  %p4122_p12 = scmp.lt.s32.totalorder %s4116_s1, %s4116_s1 }
  0x1d   :  { %p4123_p13 = por %p4122_p12, %p4121_p11 }
  0x1f   :  { %p4124_p0 = pnand %p4123_p13, %p4117_p10 }
  0x21   :  { %4127 = shalt.err (!%p4124_p0)
}
  0x22   :  { %27 = dma.hbm_to_vmem [thread:$0]  %s4344_s0, 512, %s22_s14, [#allocation3], %s4198_s29, %s4198_s29, %s4199_s30  }
  0x23   :  { %s4136_s3 = scalar_lea.vmem %s47_s16, 64  ;;  %p4141_p2 = scmp.lt.s32.totalorder %s47_s16, %s47_s16 }
  0x24   :  { %p4137_p1 = scmp.ne.s32.totalorder %s47_s16, %s4136_s3  ;;  %p4142_p3 = scmp.lt.s32.totalorder %s4136_s3, %s4136_s3 }
  0x26   :  { %p4143_p4 = por %p4142_p3, %p4141_p2 }
  0x28   :  { %p4144_p5 = pnand %p4143_p4, %p4137_p1 }
  0x2a   :  { %4147 = shalt.err (!%p4144_p5)
}
  0x2b   :  { %49 = dma.hbm_to_vmem [thread:$0]  %s4346_s2, 64, %s47_s16, [#allocation6]  }
  0x2c   :  { %s4202_s21 = smov [#allocation10]  }
  0x2d   :  { %s69_s22 = sshll.u32 %s4202_s21, 4  ;;  %s70_s22 = int_to_ptr.vmem [resolvable:$true] %s69_s22 }
  0x2e   :  { %s4156_s23 = scalar_lea.vmem %s70_s22, 16384  ;;  %p4161_p7 = scmp.lt.s32.totalorder %s70_s22, %s70_s22 }
  0x2f   :  { %p4157_p6 = scmp.ne.s32.totalorder %s70_s22, %s4156_s23  ;;  %p4162_p8 = scmp.lt.s32.totalorder %s4156_s23, %s4156_s23 }
  0x31   :  { %p4163_p9 = por %p4162_p8, %p4161_p7 }
  0x33   :  { %p4164_p10 = pnand %p4163_p9, %p4157_p6 }
  0x35   :  { %4167 = shalt.err (!%p4164_p10)
}
  0x36   :  { %75 = dma.hbm_to_vmem [thread:$0]  %s4349_s5, 16384, %s70_s22, [#allocation9], %s4198_s29, %s4198_s29, %s4199_s30  }
  0x37   :  { %4188 = dma.done.wait [#allocation3], 512  }
  0x38   :  { %4189 = vsyncadd [#allocation3], 4294966784 }
  0x39   :  { %4190 = dma.done.wait [#allocation6], 16448  }
  0x3a   :  { %4191 = vsyncadd [#allocation6], 4294950848 }
  0x3b   :  { %4192 = dma.done.wait [#allocation9], 32768  }
  0x3c   :  { %4193 = vsyncadd [#allocation9], 4294934528  ;;  %v3482_v0 = vld [vmem:[#allocation5 + $0xe4] ss:$16 sps:$4 sm:$0xff]   ;;  %v3486_v2 = vld [vmem:[#allocation5 + $0xe0] ss:$16 sps:$4 sm:$0xff]  }
  0x3d   :  { %v3484_v1 = vld [vmem:[#allocation5 + $0x2e4] ss:$16 sps:$4 sm:$0xff]   ;;  %907 = vmatprep.subr.bf16.mxu0 %v3482_v0  ;;  %v3487_v3 = vld [vmem:[#allocation5 + $0x2e0] ss:$16 sps:$4 sm:$0xff]   ;;  %v3583_v51 = vld [vmem:[#allocation2 + $0xc] ss:$16 sps:$4 sm:$0xff]  }
  0x3e   :  { %950 = vmatprep.subr.bf16.mxu1 %v3484_v1  ;;  %v3488_v4 = vld [vmem:[#allocation5 + $0xc4] ss:$16 sps:$4 sm:$0xff]   ;;  %908 = vmatpush1.bf16.msra.mxu0 %v3486_v2  ;;  %v3492_v6 = vld [vmem:[#allocation5 + $0xc0] ss:$16 sps:$4 sm:$0xff]   ;;  %v3586_v2 = vld [vmem:[#allocation5 + $0xec] ss:$16 sps:$4 sm:$0xff]  }
  0x3f   :  { %951 = vmatpush1.bf16.msra.mxu1 %v3487_v3  ;;  %v3490_v5 = vld [vmem:[#allocation5 + $0x2c4] ss:$16 sps:$4 sm:$0xff]   ;;  %909 = vmatprep.subr.bf16.mxu0 %v3488_v4  ;;  %v3493_v7 = vld [vmem:[#allocation5 + $0x2c0] ss:$16 sps:$4 sm:$0xff]   ;;  %v3589_v3 = vld [vmem:[#allocation5 + $0x2ec] ss:$16 sps:$4 sm:$0xff]  }
  0x40   :  { %952 = vmatprep.subr.bf16.mxu1 %v3490_v5  ;;  %v3494_v8 = vld [vmem:[#allocation5 + $0xa4] ss:$16 sps:$4 sm:$0xff]   ;;  %v3498_v10 = vld [vmem:[#allocation5 + $0xa0] ss:$16 sps:$4 sm:$0xff]   ;;  %982 = vmatprep.mubr.bf16.mxu1 %v3583_v51  ;;  %v4275_v5 = vld [vmem:[#allocation2 + $0x8] ss:$16 sps:$4 sm:$0xff]  }
  0x41   :  { %v3496_v9 = vld [vmem:[#allocation5 + $0x2a4] ss:$16 sps:$4 sm:$0xff]   ;;  %v3499_v11 = vld [vmem:[#allocation5 + $0x2a0] ss:$16 sps:$4 sm:$0xff]  }
  0x42   :  { %910 = vmatpush1.bf16.msra.mxu0 %v3492_v6  ;;  %v3500_v12 = vld [vmem:[#allocation5 + $0x84] ss:$16 sps:$4 sm:$0xff]   ;;  %v3504_v14 = vld [vmem:[#allocation5 + $0x80] ss:$16 sps:$4 sm:$0xff]   ;;  %v3584_v6 = vld [vmem:[#allocation5 + $0xe8] ss:$16 sps:$4 sm:$0xff]  }
  0x43   :  { %953 = vmatpush1.bf16.msra.mxu1 %v3493_v7  ;;  %911 = vmatprep.subr.bf16.mxu0 %v3494_v8  ;;  %v3502_v13 = vld [vmem:[#allocation5 + $0x284] ss:$16 sps:$4 sm:$0xff]   ;;  %v3505_v15 = vld [vmem:[#allocation5 + $0x280] ss:$16 sps:$4 sm:$0xff]   ;;  %v3587_v7 = vld [vmem:[#allocation5 + $0x2e8] ss:$16 sps:$4 sm:$0xff]  }
  0x44   :  { %954 = vmatprep.subr.bf16.mxu1 %v3496_v9  ;;  %v3506_v16 = vld [vmem:[#allocation5 + $0x64] ss:$16 sps:$4 sm:$0xff]   ;;  %v3510_v18 = vld [vmem:[#allocation5 + $0x60] ss:$16 sps:$4 sm:$0xff]   ;;  %v3592_v8 = vld [vmem:[#allocation5 + $0xcc] ss:$16 sps:$4 sm:$0xff]  }
  0x45   :  { %v3508_v17 = vld [vmem:[#allocation5 + $0x264] ss:$16 sps:$4 sm:$0xff]   ;;  %v3511_v19 = vld [vmem:[#allocation5 + $0x260] ss:$16 sps:$4 sm:$0xff]   ;;  %v3595_v9 = vld [vmem:[#allocation5 + $0x2cc] ss:$16 sps:$4 sm:$0xff]  }
  0x46   :  { %912 = vmatpush1.bf16.msra.mxu0 %v3498_v10  ;;  %v3512_v20 = vld [vmem:[#allocation5 + $0x44] ss:$16 sps:$4 sm:$0xff]   ;;  %v3516_v22 = vld [vmem:[#allocation5 + $0x40] ss:$16 sps:$4 sm:$0xff]   ;;  %v3590_v10 = vld [vmem:[#allocation5 + $0xc8] ss:$16 sps:$4 sm:$0xff]  }
  0x47   :  { %955 = vmatpush1.bf16.msra.mxu1 %v3499_v11  ;;  %913 = vmatprep.subr.bf16.mxu0 %v3500_v12  ;;  %v3514_v21 = vld [vmem:[#allocation5 + $0x244] ss:$16 sps:$4 sm:$0xff]   ;;  %v3517_v23 = vld [vmem:[#allocation5 + $0x240] ss:$16 sps:$4 sm:$0xff]   ;;  %v3593_v11 = vld [vmem:[#allocation5 + $0x2c8] ss:$16 sps:$4 sm:$0xff]  }
  0x48   :  { %956 = vmatprep.subr.bf16.mxu1 %v3502_v13  ;;  %v3518_v24 = vld [vmem:[#allocation5 + $0x24] ss:$16 sps:$4 sm:$0xff]   ;;  %v3522_v26 = vld [vmem:[#allocation5 + $0x20] ss:$16 sps:$4 sm:$0xff]   ;;  %v3598_v12 = vld [vmem:[#allocation5 + $0xac] ss:$16 sps:$4 sm:$0xff]  }
  0x49   :  { %v3520_v25 = vld [vmem:[#allocation5 + $0x224] ss:$16 sps:$4 sm:$0xff]   ;;  %v3523_v27 = vld [vmem:[#allocation5 + $0x220] ss:$16 sps:$4 sm:$0xff]   ;;  %v3601_v13 = vld [vmem:[#allocation5 + $0x2ac] ss:$16 sps:$4 sm:$0xff]  }
  0x4a   :  { %914 = vmatpush1.bf16.msra.mxu0 %v3504_v14  ;;  %v3524_v28 = vld [vmem:[#allocation5 + $0x4] ss:$16 sps:$4 sm:$0xff]   ;;  %v3528_v30 = vld [vmem:[#allocation5] ss:$16 sps:$4 sm:$0xff]   ;;  %v3596_v14 = vld [vmem:[#allocation5 + $0xa8] ss:$16 sps:$4 sm:$0xff]  }
  0x4b   :  { %957 = vmatpush1.bf16.msra.mxu1 %v3505_v15  ;;  %915 = vmatprep.subr.bf16.mxu0 %v3506_v16  ;;  %v3526_v29 = vld [vmem:[#allocation5 + $0x204] ss:$16 sps:$4 sm:$0xff]   ;;  %v3529_v31 = vld [vmem:[#allocation5 + $0x200] ss:$16 sps:$4 sm:$0xff]   ;;  %v3599_v15 = vld [vmem:[#allocation5 + $0x2a8] ss:$16 sps:$4 sm:$0xff]  }
  0x4c   :  { %958 = vmatprep.subr.bf16.mxu1 %v3508_v17  ;;  %v3530_v32 = vld [vmem:[#allocation5 + $0x1e4] ss:$16 sps:$4 sm:$0xff]   ;;  %v3534_v34 = vld [vmem:[#allocation5 + $0x1e0] ss:$16 sps:$4 sm:$0xff]   ;;  %v3604_v16 = vld [vmem:[#allocation5 + $0x8c] ss:$16 sps:$4 sm:$0xff]  }
  0x4d   :  { %v3532_v33 = vld [vmem:[#allocation5 + $0x3e4] ss:$16 sps:$4 sm:$0xff]   ;;  %v3535_v35 = vld [vmem:[#allocation5 + $0x3e0] ss:$16 sps:$4 sm:$0xff]   ;;  %v3607_v17 = vld [vmem:[#allocation5 + $0x28c] ss:$16 sps:$4 sm:$0xff]  }
  0x4e   :  { %916 = vmatpush1.bf16.msra.mxu0 %v3510_v18  ;;  %v3536_v36 = vld [vmem:[#allocation5 + $0x1c4] ss:$16 sps:$4 sm:$0xff]   ;;  %v3540_v38 = vld [vmem:[#allocation5 + $0x1c0] ss:$16 sps:$4 sm:$0xff]   ;;  %v3602_v18 = vld [vmem:[#allocation5 + $0x88] ss:$16 sps:$4 sm:$0xff]  }
  0x4f   :  { %959 = vmatpush1.bf16.msra.mxu1 %v3511_v19  ;;  %917 = vmatprep.subr.bf16.mxu0 %v3512_v20  ;;  %v3538_v37 = vld [vmem:[#allocation5 + $0x3c4] ss:$16 sps:$4 sm:$0xff]   ;;  %v3541_v39 = vld [vmem:[#allocation5 + $0x3c0] ss:$16 sps:$4 sm:$0xff]   ;;  %v3605_v19 = vld [vmem:[#allocation5 + $0x288] ss:$16 sps:$4 sm:$0xff]  }
  0x50   :  { %960 = vmatprep.subr.bf16.mxu1 %v3514_v21  ;;  %v3542_v40 = vld [vmem:[#allocation5 + $0x1a4] ss:$16 sps:$4 sm:$0xff]   ;;  %v3546_v42 = vld [vmem:[#allocation5 + $0x1a0] ss:$16 sps:$4 sm:$0xff]   ;;  %v3610_v20 = vld [vmem:[#allocation5 + $0x6c] ss:$16 sps:$4 sm:$0xff]  }
  0x51   :  { %v3544_v41 = vld [vmem:[#allocation5 + $0x3a4] ss:$16 sps:$4 sm:$0xff]   ;;  %v3547_v43 = vld [vmem:[#allocation5 + $0x3a0] ss:$16 sps:$4 sm:$0xff]   ;;  %v3613_v21 = vld [vmem:[#allocation5 + $0x26c] ss:$16 sps:$4 sm:$0xff]  }
  0x52   :  { %918 = vmatpush1.bf16.msra.mxu0 %v3516_v22  ;;  %v3548_v44 = vld [vmem:[#allocation5 + $0x184] ss:$16 sps:$4 sm:$0xff]   ;;  %v3552_v46 = vld [vmem:[#allocation5 + $0x180] ss:$16 sps:$4 sm:$0xff]   ;;  %v3608_v22 = vld [vmem:[#allocation5 + $0x68] ss:$16 sps:$4 sm:$0xff]  }
  0x53   :  { %961 = vmatpush1.bf16.msra.mxu1 %v3517_v23  ;;  %919 = vmatprep.subr.bf16.mxu0 %v3518_v24  ;;  %v3550_v45 = vld [vmem:[#allocation5 + $0x384] ss:$16 sps:$4 sm:$0xff]   ;;  %v3553_v47 = vld [vmem:[#allocation5 + $0x380] ss:$16 sps:$4 sm:$0xff]   ;;  %v3611_v23 = vld [vmem:[#allocation5 + $0x268] ss:$16 sps:$4 sm:$0xff]  }
  0x54   :  { %962 = vmatprep.subr.bf16.mxu1 %v3520_v25  ;;  %v3554_v48 = vld [vmem:[#allocation5 + $0x164] ss:$16 sps:$4 sm:$0xff]   ;;  %v3558_v52 = vld [vmem:[#allocation5 + $0x160] ss:$16 sps:$4 sm:$0xff]   ;;  %v3616_v24 = vld [vmem:[#allocation5 + $0x4c] ss:$16 sps:$4 sm:$0xff]  }
  0x55   :  { %v3580_v49 = vld [vmem:[#allocation2 + $0x4] ss:$16 sps:$4 sm:$0xff]   ;;  %v3559_v53 = vld [vmem:[#allocation5 + $0x360] ss:$16 sps:$4 sm:$0xff]   ;;  %v3619_v25 = vld [vmem:[#allocation5 + $0x24c] ss:$16 sps:$4 sm:$0xff]  }
  0x56   :  { %920 = vmatpush1.bf16.msra.mxu0 %v3522_v26  ;;  %v3556_v50 = vld [vmem:[#allocation5 + $0x364] ss:$16 sps:$4 sm:$0xff]   ;;  %939 = vmatprep.mubr.bf16.mxu0 %v3580_v49  ;;  %v3564_v56 = vld [vmem:[#allocation5 + $0x140] ss:$16 sps:$4 sm:$0xff]   ;;  %v3614_v26 = vld [vmem:[#allocation5 + $0x48] ss:$16 sps:$4 sm:$0xff]  }
  0x57   :  { %963 = vmatpush1.bf16.msra.mxu1 %v3523_v27  ;;  %921 = vmatprep.subr.bf16.mxu0 %v3524_v28  ;;  %v3560_v54 = vld [vmem:[#allocation5 + $0x144] ss:$16 sps:$4 sm:$0xff]   ;;  %v3565_v57 = vld [vmem:[#allocation5 + $0x340] ss:$16 sps:$4 sm:$0xff]   ;;  %v3617_v27 = vld [vmem:[#allocation5 + $0x248] ss:$16 sps:$4 sm:$0xff]  }
  0x58   :  { %964 = vmatprep.subr.bf16.mxu1 %v3526_v29  ;;  %v3562_v55 = vld [vmem:[#allocation5 + $0x344] ss:$16 sps:$4 sm:$0xff]   ;;  %v3570_v60 = vld [vmem:[#allocation5 + $0x120] ss:$16 sps:$4 sm:$0xff]   ;;  %v3622_v28 = vld [vmem:[#allocation5 + $0x2c] ss:$16 sps:$4 sm:$0xff]  }
  0x59   :  { %v3566_v58 = vld [vmem:[#allocation5 + $0x124] ss:$16 sps:$4 sm:$0xff]   ;;  %v3571_v61 = vld [vmem:[#allocation5 + $0x320] ss:$16 sps:$4 sm:$0xff]   ;;  %v3625_v29 = vld [vmem:[#allocation5 + $0x22c] ss:$16 sps:$4 sm:$0xff]  }
  0x5a   :  { %922 = vmatpush1.bf16.msra.mxu0 %v3528_v30  ;;  %v3568_v59 = vld [vmem:[#allocation5 + $0x324] ss:$16 sps:$4 sm:$0xff]   ;;  %v3576_v0 = vld [vmem:[#allocation5 + $0x100] ss:$16 sps:$4 sm:$0xff]   ;;  %v3620_v30 = vld [vmem:[#allocation5 + $0x28] ss:$16 sps:$4 sm:$0xff]  }
  0x5b   :  { %965 = vmatpush1.bf16.msra.mxu1 %v3529_v31  ;;  %923 = vmatprep.subr.bf16.mxu0 %v3530_v32  ;;  %v3572_v62 = vld [vmem:[#allocation5 + $0x104] ss:$16 sps:$4 sm:$0xff]   ;;  %v3577_v1 = vld [vmem:[#allocation5 + $0x300] ss:$16 sps:$4 sm:$0xff]   ;;  %v3623_v31 = vld [vmem:[#allocation5 + $0x228] ss:$16 sps:$4 sm:$0xff]  }
  0x5c   :  { %966 = vmatprep.subr.bf16.mxu1 %v3532_v33  ;;  %v3574_v63 = vld [vmem:[#allocation5 + $0x304] ss:$16 sps:$4 sm:$0xff]   ;;  %v4273_v4 = vld [vmem:[#allocation2] ss:$16 sps:$4 sm:$0xff]   ;;  %v3628_v32 = vld [vmem:[#allocation5 + $0xc] ss:$16 sps:$4 sm:$0xff]  }
  0x5d   :  { %v3631_v33 = vld [vmem:[#allocation5 + $0x20c] ss:$16 sps:$4 sm:$0xff]  }
  0x5e   :  { %924 = vmatpush2.bf16.msra.mxu0 %v3534_v34  ;;  %v3626_v34 = vld [vmem:[#allocation5 + $0x8] ss:$16 sps:$4 sm:$0xff]  }
  0x5f   :  { %967 = vmatpush2.bf16.msra.mxu1 %v3535_v35  ;;  %925 = vmatprep.subr.bf16.mxu0 %v3536_v36  ;;  %v3629_v35 = vld [vmem:[#allocation5 + $0x208] ss:$16 sps:$4 sm:$0xff]   ;;  %v3634_v36 = vld [vmem:[#allocation5 + $0x1ec] ss:$16 sps:$4 sm:$0xff]  }
  0x60   :  { %968 = vmatprep.subr.bf16.mxu1 %v3538_v37  ;;  %v3637_v37 = vld [vmem:[#allocation5 + $0x3ec] ss:$16 sps:$4 sm:$0xff]  }
  0x62   :  { %926 = vmatpush2.bf16.msra.mxu0 %v3540_v38  ;;  %v3632_v38 = vld [vmem:[#allocation5 + $0x1e8] ss:$16 sps:$4 sm:$0xff]  }
  0x63   :  { %969 = vmatpush2.bf16.msra.mxu1 %v3541_v39  ;;  %927 = vmatprep.subr.bf16.mxu0 %v3542_v40  ;;  %v3635_v39 = vld [vmem:[#allocation5 + $0x3e8] ss:$16 sps:$4 sm:$0xff]   ;;  %v3640_v40 = vld [vmem:[#allocation5 + $0x1cc] ss:$16 sps:$4 sm:$0xff]  }
  0x64   :  { %970 = vmatprep.subr.bf16.mxu1 %v3544_v41  ;;  %v3643_v41 = vld [vmem:[#allocation5 + $0x3cc] ss:$16 sps:$4 sm:$0xff]  }
  0x66   :  { %928 = vmatpush2.bf16.msra.mxu0 %v3546_v42  ;;  %v3638_v42 = vld [vmem:[#allocation5 + $0x1c8] ss:$16 sps:$4 sm:$0xff]  }
  0x67   :  { %971 = vmatpush2.bf16.msra.mxu1 %v3547_v43  ;;  %929 = vmatprep.subr.bf16.mxu0 %v3548_v44  ;;  %v3641_v43 = vld [vmem:[#allocation5 + $0x3c8] ss:$16 sps:$4 sm:$0xff]   ;;  %v3646_v44 = vld [vmem:[#allocation5 + $0x1ac] ss:$16 sps:$4 sm:$0xff]  }
  0x68   :  { %972 = vmatprep.subr.bf16.mxu1 %v3550_v45  ;;  %v3649_v45 = vld [vmem:[#allocation5 + $0x3ac] ss:$16 sps:$4 sm:$0xff]  }
  0x6a   :  { %930 = vmatpush2.bf16.msra.mxu0 %v3552_v46  ;;  %v3644_v46 = vld [vmem:[#allocation5 + $0x1a8] ss:$16 sps:$4 sm:$0xff]  }
  0x6b   :  { %973 = vmatpush2.bf16.msra.mxu1 %v3553_v47  ;;  %931 = vmatprep.subr.bf16.mxu0 %v3554_v48  ;;  %v3647_v47 = vld [vmem:[#allocation5 + $0x3a8] ss:$16 sps:$4 sm:$0xff]   ;;  %v3652_v48 = vld [vmem:[#allocation5 + $0x18c] ss:$16 sps:$4 sm:$0xff]  }
  0x6c   :  { %974 = vmatprep.subr.bf16.mxu1 %v3556_v50  ;;  %v3650_v50 = vld [vmem:[#allocation5 + $0x188] ss:$16 sps:$4 sm:$0xff]  }
  0x6e   :  { %932 = vmatpush2.bf16.msra.mxu0 %v3558_v52  ;;  %v3658_v52 = vld [vmem:[#allocation5 + $0x16c] ss:$16 sps:$4 sm:$0xff]  }
  0x6f   :  { %975 = vmatpush2.bf16.msra.mxu1 %v3559_v53  ;;  %933 = vmatprep.subr.bf16.mxu0 %v3560_v54  ;;  %v3661_v53 = vld [vmem:[#allocation5 + $0x36c] ss:$16 sps:$4 sm:$0xff]   ;;  %v3656_v54 = vld [vmem:[#allocation5 + $0x168] ss:$16 sps:$4 sm:$0xff]  }
  0x70   :  { %976 = vmatprep.subr.bf16.mxu1 %v3562_v55  ;;  %v3659_v55 = vld [vmem:[#allocation5 + $0x368] ss:$16 sps:$4 sm:$0xff]  }
  0x72   :  { %934 = vmatpush2.bf16.msra.mxu0 %v3564_v56  ;;  %v3664_v56 = vld [vmem:[#allocation5 + $0x14c] ss:$16 sps:$4 sm:$0xff]  }
  0x73   :  { %977 = vmatpush2.bf16.msra.mxu1 %v3565_v57  ;;  %935 = vmatprep.subr.bf16.mxu0 %v3566_v58  ;;  %v3667_v57 = vld [vmem:[#allocation5 + $0x34c] ss:$16 sps:$4 sm:$0xff]   ;;  %v3662_v58 = vld [vmem:[#allocation5 + $0x148] ss:$16 sps:$4 sm:$0xff]  }
  0x74   :  { %978 = vmatprep.subr.bf16.mxu1 %v3568_v59  ;;  %v3665_v59 = vld [vmem:[#allocation5 + $0x348] ss:$16 sps:$4 sm:$0xff]  }
  0x76   :  { %936 = vmatpush2.bf16.msra.mxu0 %v3570_v60  ;;  %v3670_v60 = vld [vmem:[#allocation5 + $0x12c] ss:$16 sps:$4 sm:$0xff]  }
  0x77   :  { %979 = vmatpush2.bf16.msra.mxu1 %v3571_v61  ;;  %937 = vmatprep.subr.bf16.mxu0 %v3572_v62  ;;  %v3673_v61 = vld [vmem:[#allocation5 + $0x32c] ss:$16 sps:$4 sm:$0xff]   ;;  %v3668_v62 = vld [vmem:[#allocation5 + $0x128] ss:$16 sps:$4 sm:$0xff]  }
  0x78   :  { %980 = vmatprep.subr.bf16.mxu1 %v3574_v63  ;;  %v3671_v63 = vld [vmem:[#allocation5 + $0x328] ss:$16 sps:$4 sm:$0xff]  }
  0x7a   :  { %938 = vmatpush2.bf16.msra.mxu0 %v3576_v0  ;;  %v3676_v0 = vld [vmem:[#allocation5 + $0x10c] ss:$16 sps:$4 sm:$0xff]  }
  0x7b   :  { %981 = vmatpush2.bf16.msra.mxu1 %v3577_v1  ;;  %993 = vmatprep.subr.bf16.mxu0 %v3586_v2  ;;  %v3679_v1 = vld [vmem:[#allocation5 + $0x30c] ss:$16 sps:$4 sm:$0xff]   ;;  %v3674_v2 = vld [vmem:[#allocation5 + $0x108] ss:$16 sps:$4 sm:$0xff]  }
  0x7c   :  { %1036 = vmatprep.subr.bf16.mxu1 %v3589_v3  ;;  %v3677_v3 = vld [vmem:[#allocation5 + $0x308] ss:$16 sps:$4 sm:$0xff]  }
  0x7d   :  { %940 = vmatmul.mubr.bf16.vlgmr.msra.gmra.mxu0 %v4273_v4 }
  0x7e   :  { %983 = vmatmul.mubr.bf16.vlgmr.msra.gmra.mxu1 %v4275_v5  ;;  %994 = vmatpush1.bf16.msra.mxu0 %v3584_v6  ;;  %v3682_v6 = vld [vmem:[#allocation8 + $0xe4] ss:$16 sps:$4 sm:$0xff]  }
  0x7f   :  { %1037 = vmatpush1.bf16.msra.mxu1 %v3587_v7  ;;  %995 = vmatprep.subr.bf16.mxu0 %v3592_v8  ;;  %v3680_v7 = vld [vmem:[#allocation8 + $0xe0] ss:$16 sps:$4 sm:$0xff]   ;;  %v3685_v8 = vld [vmem:[#allocation8 + $0xc4] ss:$16 sps:$4 sm:$0xff]  }
  0x80   :  { %1038 = vmatprep.subr.bf16.mxu1 %v3595_v9  ;;  %1025 = vmatprep.mubr.bf16.mxu0 %v3580_v49  ;;  %v3655_v49 = vld [vmem:[#allocation5 + $0x38c] ss:$16 sps:$4 sm:$0xff]   ;;  %v3683_v9 = vld [vmem:[#allocation8 + $0xc0] ss:$16 sps:$4 sm:$0xff]  }
  0x81   :  { %1068 = vmatprep.mubr.bf16.mxu1 %v3583_v51  ;;  %v3653_v51 = vld [vmem:[#allocation5 + $0x388] ss:$16 sps:$4 sm:$0xff]  }
  0x82   :  { %996 = vmatpush1.bf16.msra.mxu0 %v3590_v10  ;;  %v3688_v10 = vld [vmem:[#allocation8 + $0xa4] ss:$16 sps:$4 sm:$0xff]  }
  0x83   :  { %1039 = vmatpush1.bf16.msra.mxu1 %v3593_v11  ;;  %997 = vmatprep.subr.bf16.mxu0 %v3598_v12  ;;  %v3686_v11 = vld [vmem:[#allocation8 + $0xa0] ss:$16 sps:$4 sm:$0xff]   ;;  %v3691_v12 = vld [vmem:[#allocation8 + $0x84] ss:$16 sps:$4 sm:$0xff]  }
  0x84   :  { %1040 = vmatprep.subr.bf16.mxu1 %v3601_v13  ;;  %v3689_v13 = vld [vmem:[#allocation8 + $0x80] ss:$16 sps:$4 sm:$0xff]  }
  0x86   :  { %998 = vmatpush1.bf16.msra.mxu0 %v3596_v14  ;;  %v3694_v14 = vld [vmem:[#allocation8 + $0x64] ss:$16 sps:$4 sm:$0xff]  }
  0x87   :  { %1041 = vmatpush1.bf16.msra.mxu1 %v3599_v15  ;;  %999 = vmatprep.subr.bf16.mxu0 %v3604_v16  ;;  %v3692_v15 = vld [vmem:[#allocation8 + $0x60] ss:$16 sps:$4 sm:$0xff]   ;;  %v3730_v16 = vld [vmem:[#allocation8 + $0x2e4] ss:$16 sps:$4 sm:$0xff]  }
  0x88   :  { %1042 = vmatprep.subr.bf16.mxu1 %v3607_v17  ;;  %v3697_v17 = vld [vmem:[#allocation8 + $0x44] ss:$16 sps:$4 sm:$0xff]  }
  0x8a   :  { %1000 = vmatpush1.bf16.msra.mxu0 %v3602_v18  ;;  %v3734_v18 = vld [vmem:[#allocation8 + $0x2c0] ss:$16 sps:$4 sm:$0xff]  }
  0x8b   :  { %1043 = vmatpush1.bf16.msra.mxu1 %v3605_v19  ;;  %1001 = vmatprep.subr.bf16.mxu0 %v3610_v20  ;;  %v3736_v19 = vld [vmem:[#allocation8 + $0x2c4] ss:$16 sps:$4 sm:$0xff]  }
  0x8c   :  { %1044 = vmatprep.subr.bf16.mxu1 %v3613_v21  ;;  %v3700_v20 = vld [vmem:[#allocation8 + $0x24] ss:$16 sps:$4 sm:$0xff]   ;;  %v3698_v21 = vld [vmem:[#allocation8 + $0x20] ss:$16 sps:$4 sm:$0xff]  }
  0x8e   :  { %1002 = vmatpush1.bf16.msra.mxu0 %v3608_v22  ;;  %v3740_v22 = vld [vmem:[#allocation8 + $0x2a0] ss:$16 sps:$4 sm:$0xff]  }
  0x8f   :  { %1045 = vmatpush1.bf16.msra.mxu1 %v3611_v23  ;;  %1003 = vmatprep.subr.bf16.mxu0 %v3616_v24  ;;  %v3742_v23 = vld [vmem:[#allocation8 + $0x2a4] ss:$16 sps:$4 sm:$0xff]  }
  0x90   :  { %1046 = vmatprep.subr.bf16.mxu1 %v3619_v25  ;;  %v3703_v24 = vld [vmem:[#allocation8 + $0x4] ss:$16 sps:$4 sm:$0xff]   ;;  %v3701_v25 = vld [vmem:[#allocation8] ss:$16 sps:$4 sm:$0xff]  }
  0x92   :  { %1004 = vmatpush1.bf16.msra.mxu0 %v3614_v26  ;;  %v3746_v26 = vld [vmem:[#allocation8 + $0x280] ss:$16 sps:$4 sm:$0xff]  }
  0x93   :  { %1047 = vmatpush1.bf16.msra.mxu1 %v3617_v27  ;;  %1005 = vmatprep.subr.bf16.mxu0 %v3622_v28  ;;  %v3748_v27 = vld [vmem:[#allocation8 + $0x284] ss:$16 sps:$4 sm:$0xff]  }
  0x94   :  { %1048 = vmatprep.subr.bf16.mxu1 %v3625_v29  ;;  %v3706_v28 = vld [vmem:[#allocation8 + $0x1e4] ss:$16 sps:$4 sm:$0xff]   ;;  %v3704_v29 = vld [vmem:[#allocation8 + $0x1e0] ss:$16 sps:$4 sm:$0xff]  }
  0x96   :  { %1006 = vmatpush1.bf16.msra.mxu0 %v3620_v30  ;;  %v3752_v30 = vld [vmem:[#allocation8 + $0x260] ss:$16 sps:$4 sm:$0xff]  }
  0x97   :  { %1049 = vmatpush1.bf16.msra.mxu1 %v3623_v31  ;;  %1007 = vmatprep.subr.bf16.mxu0 %v3628_v32  ;;  %v3754_v31 = vld [vmem:[#allocation8 + $0x264] ss:$16 sps:$4 sm:$0xff]  }
  0x98   :  { %1050 = vmatprep.subr.bf16.mxu1 %v3631_v33  ;;  %v3709_v32 = vld [vmem:[#allocation8 + $0x1c4] ss:$16 sps:$4 sm:$0xff]   ;;  %v3707_v33 = vld [vmem:[#allocation8 + $0x1c0] ss:$16 sps:$4 sm:$0xff]  }
  0x9a   :  { %1008 = vmatpush1.bf16.msra.mxu0 %v3626_v34  ;;  %v3758_v34 = vld [vmem:[#allocation8 + $0x240] ss:$16 sps:$4 sm:$0xff]  }
  0x9b   :  { %1051 = vmatpush1.bf16.msra.mxu1 %v3629_v35  ;;  %1009 = vmatprep.subr.bf16.mxu0 %v3634_v36  ;;  %v3760_v35 = vld [vmem:[#allocation8 + $0x244] ss:$16 sps:$4 sm:$0xff]  }
  0x9c   :  { %1052 = vmatprep.subr.bf16.mxu1 %v3637_v37  ;;  %v3712_v36 = vld [vmem:[#allocation8 + $0x1a4] ss:$16 sps:$4 sm:$0xff]   ;;  %v3710_v37 = vld [vmem:[#allocation8 + $0x1a0] ss:$16 sps:$4 sm:$0xff]  }
  0x9e   :  { %1010 = vmatpush2.bf16.msra.mxu0 %v3632_v38  ;;  %v3764_v38 = vld [vmem:[#allocation8 + $0x220] ss:$16 sps:$4 sm:$0xff]  }
  0x9f   :  { %1053 = vmatpush2.bf16.msra.mxu1 %v3635_v39  ;;  %1011 = vmatprep.subr.bf16.mxu0 %v3640_v40  ;;  %v3766_v39 = vld [vmem:[#allocation8 + $0x224] ss:$16 sps:$4 sm:$0xff]  }
  0xa0   :  { %1054 = vmatprep.subr.bf16.mxu1 %v3643_v41  ;;  %v3715_v40 = vld [vmem:[#allocation8 + $0x184] ss:$16 sps:$4 sm:$0xff]   ;;  %v3713_v41 = vld [vmem:[#allocation8 + $0x180] ss:$16 sps:$4 sm:$0xff]  }
  0xa2   :  { %1012 = vmatpush2.bf16.msra.mxu0 %v3638_v42  ;;  %v3770_v42 = vld [vmem:[#allocation8 + $0x200] ss:$16 sps:$4 sm:$0xff]  }
  0xa3   :  { %1055 = vmatpush2.bf16.msra.mxu1 %v3641_v43  ;;  %1013 = vmatprep.subr.bf16.mxu0 %v3646_v44  ;;  %v3772_v43 = vld [vmem:[#allocation8 + $0x204] ss:$16 sps:$4 sm:$0xff]  }
  0xa4   :  { %1056 = vmatprep.subr.bf16.mxu1 %v3649_v45  ;;  %v3718_v44 = vld [vmem:[#allocation8 + $0x164] ss:$16 sps:$4 sm:$0xff]   ;;  %v3716_v45 = vld [vmem:[#allocation8 + $0x160] ss:$16 sps:$4 sm:$0xff]  }
  0xa6   :  { %1014 = vmatpush2.bf16.msra.mxu0 %v3644_v46  ;;  %v3776_v46 = vld [vmem:[#allocation8 + $0x3e0] ss:$16 sps:$4 sm:$0xff]  }
  0xa7   :  { %1057 = vmatpush2.bf16.msra.mxu1 %v3647_v47  ;;  %1015 = vmatprep.subr.bf16.mxu0 %v3652_v48  ;;  %v3778_v47 = vld [vmem:[#allocation8 + $0x3e4] ss:$16 sps:$4 sm:$0xff]  }
  0xa8   :  { %1058 = vmatprep.subr.bf16.mxu1 %v3655_v49  ;;  %v3721_v48 = vld [vmem:[#allocation8 + $0x144] ss:$16 sps:$4 sm:$0xff]   ;;  %v3719_v49 = vld [vmem:[#allocation8 + $0x140] ss:$16 sps:$4 sm:$0xff]  }
  0xaa   :  { %1016 = vmatpush2.bf16.msra.mxu0 %v3650_v50  ;;  %v3782_v50 = vld [vmem:[#allocation8 + $0x3c0] ss:$16 sps:$4 sm:$0xff]  }
  0xab   :  { %1059 = vmatpush2.bf16.msra.mxu1 %v3653_v51  ;;  %1017 = vmatprep.subr.bf16.mxu0 %v3658_v52  ;;  %v3784_v51 = vld [vmem:[#allocation8 + $0x3c4] ss:$16 sps:$4 sm:$0xff]  }
  0xac   :  { %1060 = vmatprep.subr.bf16.mxu1 %v3661_v53  ;;  %v3724_v52 = vld [vmem:[#allocation8 + $0x124] ss:$16 sps:$4 sm:$0xff]   ;;  %v3722_v53 = vld [vmem:[#allocation8 + $0x120] ss:$16 sps:$4 sm:$0xff]  }
  0xae   :  { %1018 = vmatpush2.bf16.msra.mxu0 %v3656_v54  ;;  %v3788_v54 = vld [vmem:[#allocation8 + $0x3a0] ss:$16 sps:$4 sm:$0xff]  }
  0xaf   :  { %1061 = vmatpush2.bf16.msra.mxu1 %v3659_v55  ;;  %1019 = vmatprep.subr.bf16.mxu0 %v3664_v56  ;;  %v3790_v55 = vld [vmem:[#allocation8 + $0x3a4] ss:$16 sps:$4 sm:$0xff]  }
  0xb0   :  { %1062 = vmatprep.subr.bf16.mxu1 %v3667_v57  ;;  %v3727_v56 = vld [vmem:[#allocation8 + $0x104] ss:$16 sps:$4 sm:$0xff]   ;;  %v3725_v57 = vld [vmem:[#allocation8 + $0x100] ss:$16 sps:$4 sm:$0xff]  }
  0xb2   :  { %1020 = vmatpush2.bf16.msra.mxu0 %v3662_v58  ;;  %v3794_v58 = vld [vmem:[#allocation8 + $0x380] ss:$16 sps:$4 sm:$0xff]  }
  0xb3   :  { %1063 = vmatpush2.bf16.msra.mxu1 %v3665_v59  ;;  %1021 = vmatprep.subr.bf16.mxu0 %v3670_v60  ;;  %v3796_v59 = vld [vmem:[#allocation8 + $0x384] ss:$16 sps:$4 sm:$0xff]   ;;  %v3733_v60 = vld [vmem:[#allocation8 + $0xec] ss:$16 sps:$4 sm:$0xff]  }
  0xb4   :  { %1064 = vmatprep.subr.bf16.mxu1 %v3673_v61  ;;  %v3800_v61 = vld [vmem:[#allocation8 + $0x360] ss:$16 sps:$4 sm:$0xff]  }
  0xb6   :  { %1022 = vmatpush2.bf16.msra.mxu0 %v3668_v62  ;;  %v3802_v62 = vld [vmem:[#allocation8 + $0x364] ss:$16 sps:$4 sm:$0xff]  }
  0xb7   :  { %1065 = vmatpush2.bf16.msra.mxu1 %v3671_v63  ;;  %1023 = vmatprep.subr.bf16.mxu0 %v3676_v0  ;;  %v3808_v63 = vld [vmem:[#allocation8 + $0x344] ss:$16 sps:$4 sm:$0xff]   ;;  %v3806_v0 = vld [vmem:[#allocation8 + $0x340] ss:$16 sps:$4 sm:$0xff]  }
  0xb8   :  { %1066 = vmatprep.subr.bf16.mxu1 %v3679_v1  ;;  %v3814_v1 = vld [vmem:[#allocation8 + $0x324] ss:$16 sps:$4 sm:$0xff]  }
  0xba   :  { %1024 = vmatpush2.bf16.msra.mxu0 %v3674_v2  ;;  %v3812_v2 = vld [vmem:[#allocation8 + $0x320] ss:$16 sps:$4 sm:$0xff]  }
  0xbb   :  { %1067 = vmatpush2.bf16.msra.mxu1 %v3677_v3  ;;  %1881 = vmatprep.subr.bf16.mxu0 %v3682_v6  ;;  %v3820_v3 = vld [vmem:[#allocation8 + $0x304] ss:$16 sps:$4 sm:$0xff]   ;;  %v3818_v6 = vld [vmem:[#allocation8 + $0x300] ss:$16 sps:$4 sm:$0xff]  }
  0xbc   :  { %1924 = vmatprep.subr.bf16.mxu1 %v3730_v16 }
  0xbd   :  { %1026 = vmatmul.mubr.bf16.vlgmr.msra.gmra.mxu0 %v4273_v4  ;;  %v3728_v4 = vld [vmem:[#allocation8 + $0x2e0] ss:$16 sps:$4 sm:$0xff]  }
  0xbe   :  { %1069 = vmatmul.mubr.bf16.vlgmr.msra.gmra.mxu1 %v4275_v5  ;;  %1882 = vmatpush1.bf16.msra.mxu0 %v3680_v7  ;;  %v3695_v5 = vld [vmem:[#allocation8 + $0x40] ss:$16 sps:$4 sm:$0xff]   ;;  %v3826_v7 = vld [vmem:[#allocation8 + $0x2ec] ss:$16 sps:$4 sm:$0xff]  }
  0xbf   :  { %1883 = vmatprep.subr.bf16.mxu0 %v3685_v8  ;;  %1925 = vmatpush1.bf16.msra.mxu1 %v3728_v4  ;;  %v227_v8 = vlaneseq }
  0xc0   :  { %1926 = vmatprep.subr.bf16.mxu1 %v3736_v19 }
  0xc2   :  { %1884 = vmatpush1.bf16.msra.mxu0 %v3683_v9  ;;  %v4281_v9 = vshrl.u32 %v227_v8, 7  ;;  %v3817_v8 = vld [vmem:[#allocation8 + $0x12c] ss:$16 sps:$4 sm:$0xff]  }
  0xc3   :  { %1885 = vmatprep.subr.bf16.mxu0 %v3688_v10  ;;  %1927 = vmatpush1.bf16.msra.mxu1 %v3734_v18 }
  0xc4   :  { %1928 = vmatprep.subr.bf16.mxu1 %v3742_v23  ;;  %v4284_v10 = vsub.s32 1, %v4281_v9 }
  0xc6   :  { %1886 = vmatpush1.bf16.msra.mxu0 %v3686_v11  ;;  %v4286_v11 = vld [vmem:[#allocation7] sm:$0xf] }
  0xc7   :  { %1887 = vmatprep.subr.bf16.mxu0 %v3691_v12  ;;  %1929 = vmatpush1.bf16.msra.mxu1 %v3740_v22  ;;  %v4289_v12 = vsub.s32 0, %v4281_v9 }
  0xc8   :  { %1930 = vmatprep.subr.bf16.mxu1 %v3748_v27 }
  0xca   :  { %1888 = vmatpush1.bf16.msra.mxu0 %v3689_v13  ;;  %v234_v13 = vrot.slane %v4286_v11, %v4284_v10 }
  0xcb   :  { %1889 = vmatprep.subr.bf16.mxu0 %v3694_v14  ;;  %1931 = vmatpush1.bf16.msra.mxu1 %v3746_v26  ;;  %v230_v14 = vrot.slane %v4286_v11, %v4289_v12 }
  0xcc   :  { %1932 = vmatprep.subr.bf16.mxu1 %v3754_v31 }
  0xce   :  { %1890 = vmatpush1.bf16.msra.mxu0 %v3692_v15 }
  0xcf   :  { %1891 = vmatprep.subr.bf16.mxu0 %v3697_v17  ;;  %1933 = vmatpush1.bf16.msra.mxu1 %v3752_v30 }
  0xd0   :  { %1934 = vmatprep.subr.bf16.mxu1 %v3760_v35 }
  0xd2   :  { %1892 = vmatpush1.bf16.msra.mxu0 %v3695_v5 }
  0xd3   :  { %1893 = vmatprep.subr.bf16.mxu0 %v3700_v20  ;;  %1935 = vmatpush1.bf16.msra.mxu1 %v3758_v34  ;;  %v3731_v34 = vld [vmem:[#allocation8 + $0xe8] ss:$16 sps:$4 sm:$0xff]  }
  0xd4   :  { %1936 = vmatprep.subr.bf16.mxu1 %v3766_v39  ;;  %v3743_v39 = vld [vmem:[#allocation8 + $0xa8] ss:$16 sps:$4 sm:$0xff]  }
  0xd6   :  { %1894 = vmatpush1.bf16.msra.mxu0 %v3698_v21 }
  0xd7   :  { %1895 = vmatprep.subr.bf16.mxu0 %v3703_v24  ;;  %1937 = vmatpush1.bf16.msra.mxu1 %v3764_v38  ;;  %v3745_v38 = vld [vmem:[#allocation8 + $0xac] ss:$16 sps:$4 sm:$0xff]  }
  0xd8   :  { %1938 = vmatprep.subr.bf16.mxu1 %v3772_v43  ;;  %v3755_v43 = vld [vmem:[#allocation8 + $0x68] ss:$16 sps:$4 sm:$0xff]  }
  0xda   :  { %1896 = vmatpush1.bf16.msra.mxu0 %v3701_v25 }
  0xdb   :  { %1897 = vmatprep.subr.bf16.mxu0 %v3706_v28  ;;  %1939 = vmatpush1.bf16.msra.mxu1 %v3770_v42  ;;  %v3757_v42 = vld [vmem:[#allocation8 + $0x6c] ss:$16 sps:$4 sm:$0xff]  }
  0xdc   :  { %1940 = vmatprep.subr.bf16.mxu1 %v3778_v47  ;;  %v3767_v47 = vld [vmem:[#allocation8 + $0x28] ss:$16 sps:$4 sm:$0xff]  }
  0xde   :  { %1898 = vmatpush2.bf16.msra.mxu0 %v3704_v29 }
  0xdf   :  { %1899 = vmatprep.subr.bf16.mxu0 %v3709_v32  ;;  %1941 = vmatpush2.bf16.msra.mxu1 %v3776_v46  ;;  %v3769_v46 = vld [vmem:[#allocation8 + $0x2c] ss:$16 sps:$4 sm:$0xff]  }
  0xe0   :  { %1942 = vmatprep.subr.bf16.mxu1 %v3784_v51  ;;  %v3779_v51 = vld [vmem:[#allocation8 + $0x1e8] ss:$16 sps:$4 sm:$0xff]  }
  0xe2   :  { %1900 = vmatpush2.bf16.msra.mxu0 %v3707_v33 }
  0xe3   :  { %1901 = vmatprep.subr.bf16.mxu0 %v3712_v36  ;;  %1943 = vmatpush2.bf16.msra.mxu1 %v3782_v50  ;;  %v3739_v36 = vld [vmem:[#allocation8 + $0xcc] ss:$16 sps:$4 sm:$0xff]  }
  0xe4   :  { %1944 = vmatprep.subr.bf16.mxu1 %v3790_v55  ;;  %v3781_v50 = vld [vmem:[#allocation8 + $0x1ec] ss:$16 sps:$4 sm:$0xff]   ;;  %v3791_v55 = vld [vmem:[#allocation8 + $0x1a8] ss:$16 sps:$4 sm:$0xff]  }
  0xe6   :  { %1902 = vmatpush2.bf16.msra.mxu0 %v3710_v37  ;;  %v3737_v37 = vld [vmem:[#allocation8 + $0xc8] ss:$16 sps:$4 sm:$0xff]  }
  0xe7   :  { %1903 = vmatprep.subr.bf16.mxu0 %v3715_v40  ;;  %1945 = vmatpush2.bf16.msra.mxu1 %v3788_v54  ;;  %v3751_v40 = vld [vmem:[#allocation8 + $0x8c] ss:$16 sps:$4 sm:$0xff]  }
  0xe8   :  { %1946 = vmatprep.subr.bf16.mxu1 %v3796_v59  ;;  %v3793_v54 = vld [vmem:[#allocation8 + $0x1ac] ss:$16 sps:$4 sm:$0xff]   ;;  %v4299_v59 = vsub.s32 3, %v4281_v9 }
  0xea   :  { %1904 = vmatpush2.bf16.msra.mxu0 %v3713_v41  ;;  %v3749_v41 = vld [vmem:[#allocation8 + $0x88] ss:$16 sps:$4 sm:$0xff]  }
  0xeb   :  { %1905 = vmatprep.subr.bf16.mxu0 %v3718_v44  ;;  %1947 = vmatpush2.bf16.msra.mxu1 %v3794_v58  ;;  %v3763_v44 = vld [vmem:[#allocation8 + $0x4c] ss:$16 sps:$4 sm:$0xff]  }
  0xec   :  { %1948 = vmatprep.subr.bf16.mxu1 %v3802_v62  ;;  %v3805_v58 = vld [vmem:[#allocation8 + $0x16c] ss:$16 sps:$4 sm:$0xff]  }
  0xed   :  { %v3811_v62 = vld [vmem:[#allocation8 + $0x14c] ss:$16 sps:$4 sm:$0xff]  }
  0xee   :  { %1906 = vmatpush2.bf16.msra.mxu0 %v3716_v45  ;;  %v3761_v45 = vld [vmem:[#allocation8 + $0x48] ss:$16 sps:$4 sm:$0xff]  }
  0xef   :  { %1907 = vmatprep.subr.bf16.mxu0 %v3721_v48  ;;  %1949 = vmatpush2.bf16.msra.mxu1 %v3800_v61  ;;  %v3775_v48 = vld [vmem:[#allocation8 + $0xc] ss:$16 sps:$4 sm:$0xff]   ;;  %v3803_v61 = vld [vmem:[#allocation8 + $0x168] ss:$16 sps:$4 sm:$0xff]  }
  0xf0   :  { %1950 = vmatprep.subr.bf16.mxu1 %v3808_v63  ;;  %v242_v63 = vrot.slane %v4286_v11, %v4299_v59 }
  0xf2   :  { %1908 = vmatpush2.bf16.msra.mxu0 %v3719_v49  ;;  %v3773_v49 = vld [vmem:[#allocation8 + $0x8] ss:$16 sps:$4 sm:$0xff]  }
  0xf3   :  { %1909 = vmatprep.subr.bf16.mxu0 %v3724_v52  ;;  %1951 = vmatpush2.bf16.msra.mxu1 %v3806_v0  ;;  %v3787_v52 = vld [vmem:[#allocation8 + $0x1cc] ss:$16 sps:$4 sm:$0xff]  }
  0xf4   :  { %1952 = vmatprep.subr.bf16.mxu1 %v3814_v1 }
  0xf6   :  { %1910 = vmatpush2.bf16.msra.mxu0 %v3722_v53  ;;  %v3785_v53 = vld [vmem:[#allocation8 + $0x1c8] ss:$16 sps:$4 sm:$0xff]  }
  0xf7   :  { %1911 = vmatprep.subr.bf16.mxu0 %v3727_v56  ;;  %1953 = vmatpush2.bf16.msra.mxu1 %v3812_v2  ;;  %v3799_v56 = vld [vmem:[#allocation8 + $0x18c] ss:$16 sps:$4 sm:$0xff]  }
  0xf8   :  { %1954 = vmatprep.subr.bf16.mxu1 %v3820_v3  ;;  %v3809_v3 = vld [vmem:[#allocation8 + $0x148] ss:$16 sps:$4 sm:$0xff]  }
  0xfa   :  { %1912 = vmatpush2.bf16.msra.mxu0 %v3725_v57  ;;  %v3797_v57 = vld [vmem:[#allocation8 + $0x188] ss:$16 sps:$4 sm:$0xff]  }
  0xfb   :  { %1967 = vmatprep.subr.bf16.mxu0 %v3733_v60  ;;  %1955 = vmatpush2.bf16.msra.mxu1 %v3818_v6  ;;  %v4302_v60 = vsub.s32 2, %v4281_v9 }
  0xfc   :  { %2010 = vmatprep.subr.bf16.mxu1 %v3826_v7 }
  0xfd   :  { %v238_v0 = vrot.slane %v4286_v11, %v4302_v60 }
 0x13d   :  { %v941_v15 = vpop.f32.mrf.mxu0 }
 0x13e   :  { %v984_v16 = vpop.f32.mrf.mxu1  ;;  %v942_v18 = vadd.f32 %v941_v15, %v230_v14 }
 0x13f   :  { %v943_v17 = vpop.f32.mrf.mxu0 }
 0x140   :  { %v986_v4 = vpop.f32.mrf.mxu1  ;;  %v944_v5 = vadd.f32 %v943_v17, %v234_v13  ;;  %v985_v26 = vadd.f32 %v984_v16, %v942_v18  ;;  %v3815_v17 = vld [vmem:[#allocation8 + $0x128] ss:$16 sps:$4 sm:$0xff]  }
 0x141   :  { %v945_v19 = vpop.f32.mrf.mxu0 }
 0x142   :  { %v988_v20 = vpop.f32.mrf.mxu1  ;;  %v946_v21 = vadd.f32 %v945_v19, %v230_v14  ;;  %v987_v23 = vadd.f32 %v986_v4, %v944_v5  ;;  %v1079_v32 = vmax.f32 %v985_v26, 0.0  ;;  %v3823_v5 = vld [vmem:[#allocation8 + $0x10c] ss:$16 sps:$4 sm:$0xff]  }
 0x143   :  { %v947_v22 = vpop.f32.mrf.mxu0 }
 0x144   :  { %v989_v24 = vadd.f32 %v988_v20, %v946_v21  ;;  %v948_v25 = vadd.f32 %v947_v22, %v234_v13  ;;  %v990_v27 = vpop.f32.mrf.mxu1  ;;  %v1080_v30 = vmax.f32 %v987_v23, 0.0  ;;  %v3821_v23 = vld [vmem:[#allocation8 + $0x108] ss:$16 sps:$4 sm:$0xff]  }
 0x146   :  { %v991_v28 = vadd.f32 %v990_v27, %v948_v25  ;;  %v1083_v29 = vmax.f32 %v989_v24, 0.0 }
 0x148   :  { %v1084_v31 = vmax.f32 %v991_v28, 0.0  ;;  %v4295_v35 = vpack.c.bf16 %v1083_v29, %v1079_v32  ;;  %v3824_v29 = vld [vmem:[#allocation8 + $0x2e8] ss:$16 sps:$4 sm:$0xff]  }
 0x149   :  { %v3827_v32 = vld [vmem:[#allocation8 + $0x2c8] ss:$16 sps:$4 sm:$0xff]  }
 0x14a   :  { %v1088_v33 = vpack.c.bf16 %v1084_v31, %v1080_v30  ;;  %v3829_v31 = vld [vmem:[#allocation8 + $0x2cc] ss:$16 sps:$4 sm:$0xff]  }
 0x14c   :  { %1913 = vmatprep.mubr.bf16.mxu0 %v1088_v33 }
 0x14d   :  { %1914 = vmatmul.mubr.bf16.vlgmr.msra.gmra.mxu0 %v4295_v35 }
 0x14e   :  { %1968 = vmatpush1.bf16.msra.mxu0 %v3731_v34  ;;  %1999 = vmatprep.mubr.bf16.mxu0 %v1088_v33  ;;  %v3832_v33 = vld [vmem:[#allocation8 + $0x2ac] ss:$16 sps:$4 sm:$0xff]   ;;  %v3830_v34 = vld [vmem:[#allocation8 + $0x2a8] ss:$16 sps:$4 sm:$0xff]  }
 0x14f   :  { %1969 = vmatprep.subr.bf16.mxu0 %v3739_v36  ;;  %v3835_v36 = vld [vmem:[#allocation8 + $0x28c] ss:$16 sps:$4 sm:$0xff]  }
 0x152   :  { %1970 = vmatpush1.bf16.msra.mxu0 %v3737_v37  ;;  %v3872_v37 = vld [vmem:[#allocation10 + $0xe0] ss:$16 sps:$4 sm:$0xff]  }
 0x153   :  { %1971 = vmatprep.subr.bf16.mxu0 %v3745_v38  ;;  %v3874_v38 = vld [vmem:[#allocation10 + $0xe4] ss:$16 sps:$4 sm:$0xff]  }
 0x156   :  { %1972 = vmatpush1.bf16.msra.mxu0 %v3743_v39  ;;  %v3877_v39 = vld [vmem:[#allocation10 + $0xc4] ss:$16 sps:$4 sm:$0xff]  }
 0x157   :  { %1973 = vmatprep.subr.bf16.mxu0 %v3751_v40  ;;  %v3833_v40 = vld [vmem:[#allocation8 + $0x288] ss:$16 sps:$4 sm:$0xff]  }
 0x15a   :  { %1974 = vmatpush1.bf16.msra.mxu0 %v3749_v41  ;;  %v3838_v41 = vld [vmem:[#allocation8 + $0x26c] ss:$16 sps:$4 sm:$0xff]  }
 0x15b   :  { %1975 = vmatprep.subr.bf16.mxu0 %v3757_v42  ;;  %v3880_v42 = vld [vmem:[#allocation10 + $0xa4] ss:$16 sps:$4 sm:$0xff]  }
 0x15e   :  { %1976 = vmatpush1.bf16.msra.mxu0 %v3755_v43  ;;  %v3836_v43 = vld [vmem:[#allocation8 + $0x268] ss:$16 sps:$4 sm:$0xff]  }
 0x15f   :  { %1977 = vmatprep.subr.bf16.mxu0 %v3763_v44  ;;  %v3841_v44 = vld [vmem:[#allocation8 + $0x24c] ss:$16 sps:$4 sm:$0xff]  }
 0x162   :  { %1978 = vmatpush1.bf16.msra.mxu0 %v3761_v45  ;;  %v3878_v45 = vld [vmem:[#allocation10 + $0xa0] ss:$16 sps:$4 sm:$0xff]  }
 0x163   :  { %1979 = vmatprep.subr.bf16.mxu0 %v3769_v46  ;;  %v3883_v46 = vld [vmem:[#allocation10 + $0x84] ss:$16 sps:$4 sm:$0xff]  }
 0x166   :  { %1980 = vmatpush1.bf16.msra.mxu0 %v3767_v47  ;;  %v3839_v47 = vld [vmem:[#allocation8 + $0x248] ss:$16 sps:$4 sm:$0xff]  }
 0x167   :  { %1981 = vmatprep.subr.bf16.mxu0 %v3775_v48  ;;  %v3844_v48 = vld [vmem:[#allocation8 + $0x22c] ss:$16 sps:$4 sm:$0xff]  }
 0x16a   :  { %1982 = vmatpush1.bf16.msra.mxu0 %v3773_v49  ;;  %v3881_v49 = vld [vmem:[#allocation10 + $0x80] ss:$16 sps:$4 sm:$0xff]  }
 0x16b   :  { %1983 = vmatprep.subr.bf16.mxu0 %v3781_v50  ;;  %v3886_v50 = vld [vmem:[#allocation10 + $0x64] ss:$16 sps:$4 sm:$0xff]  }
 0x16e   :  { %1984 = vmatpush2.bf16.msra.mxu0 %v3779_v51  ;;  %v3842_v51 = vld [vmem:[#allocation8 + $0x228] ss:$16 sps:$4 sm:$0xff]  }
 0x16f   :  { %1985 = vmatprep.subr.bf16.mxu0 %v3787_v52  ;;  %v3847_v52 = vld [vmem:[#allocation8 + $0x20c] ss:$16 sps:$4 sm:$0xff]  }
 0x172   :  { %1986 = vmatpush2.bf16.msra.mxu0 %v3785_v53  ;;  %v3884_v53 = vld [vmem:[#allocation10 + $0x60] ss:$16 sps:$4 sm:$0xff]  }
 0x173   :  { %1987 = vmatprep.subr.bf16.mxu0 %v3793_v54  ;;  %v3889_v54 = vld [vmem:[#allocation10 + $0x44] ss:$16 sps:$4 sm:$0xff]  }
 0x176   :  { %1988 = vmatpush2.bf16.msra.mxu0 %v3791_v55  ;;  %v3845_v55 = vld [vmem:[#allocation8 + $0x208] ss:$16 sps:$4 sm:$0xff]  }
 0x177   :  { %1989 = vmatprep.subr.bf16.mxu0 %v3799_v56  ;;  %v3850_v56 = vld [vmem:[#allocation8 + $0x3ec] ss:$16 sps:$4 sm:$0xff]  }
 0x17a   :  { %1990 = vmatpush2.bf16.msra.mxu0 %v3797_v57  ;;  %v3887_v57 = vld [vmem:[#allocation10 + $0x40] ss:$16 sps:$4 sm:$0xff]  }
 0x17b   :  { %1991 = vmatprep.subr.bf16.mxu0 %v3805_v58  ;;  %v3892_v58 = vld [vmem:[#allocation10 + $0x24] ss:$16 sps:$4 sm:$0xff]  }
 0x17d   :  { %v1027_v1 = vpop.f32.mrf.mxu0 }
 0x17e   :  { %v1070_v2 = vpop.f32.mrf.mxu1  ;;  %1992 = vmatpush2.bf16.msra.mxu0 %v3803_v61  ;;  %v1028_v13 = vadd.f32 %v1027_v1, %v238_v0  ;;  %v3848_v61 = vld [vmem:[#allocation8 + $0x3e8] ss:$16 sps:$4 sm:$0xff]  }
 0x17f   :  { %v1029_v6 = vpop.f32.mrf.mxu0  ;;  %1993 = vmatprep.subr.bf16.mxu0 %v3811_v62  ;;  %v3853_v62 = vld [vmem:[#allocation8 + $0x3cc] ss:$16 sps:$4 sm:$0xff]   ;;  %v3851_v1 = vld [vmem:[#allocation8 + $0x3c8] ss:$16 sps:$4 sm:$0xff]  }
 0x180   :  { %v1072_v7 = vpop.f32.mrf.mxu1  ;;  %v1030_v9 = vadd.f32 %v1029_v6, %v242_v63  ;;  %v1071_v20 = vadd.f32 %v1070_v2, %v1028_v13  ;;  %v3856_v2 = vld [vmem:[#allocation8 + $0x3ac] ss:$16 sps:$4 sm:$0xff]   ;;  %v3898_v6 = vld [vmem:[#allocation10 + $0x1e4] ss:$16 sps:$4 sm:$0xff]  }
 0x181   :  { %v1031_v14 = vpop.f32.mrf.mxu0  ;;  %v3901_v13 = vld [vmem:[#allocation10 + $0x1c4] ss:$16 sps:$4 sm:$0xff]  }
 0x182   :  { %v1074_v15 = vpop.f32.mrf.mxu1  ;;  %v1032_v16 = vadd.f32 %v1031_v14, %v238_v0  ;;  %1994 = vmatpush2.bf16.msra.mxu0 %v3809_v3  ;;  %v1073_v18 = vadd.f32 %v1072_v7, %v1030_v9  ;;  %v1081_v27 = vmax.f32 %v1071_v20, 0.0  ;;  %v3895_v0 = vld [vmem:[#allocation10 + $0x4] ss:$16 sps:$4 sm:$0xff]   ;;  %v3893_v3 = vld [vmem:[#allocation10] ss:$16 sps:$4 sm:$0xff]  }
 0x183   :  { %v1033_v4 = vpop.f32.mrf.mxu0  ;;  %1995 = vmatprep.subr.bf16.mxu0 %v3817_v8  ;;  %v3854_v7 = vld [vmem:[#allocation8 + $0x3a8] ss:$16 sps:$4 sm:$0xff]   ;;  %v3859_v8 = vld [vmem:[#allocation8 + $0x38c] ss:$16 sps:$4 sm:$0xff]   ;;  %v3896_v9 = vld [vmem:[#allocation10 + $0x1e0] ss:$16 sps:$4 sm:$0xff]  }
 0x184   :  { %v1075_v11 = vadd.f32 %v1074_v15, %v1032_v16  ;;  %v1034_v19 = vadd.f32 %v1033_v4, %v242_v63  ;;  %v1076_v21 = vpop.f32.mrf.mxu1  ;;  %v1082_v25 = vmax.f32 %v1073_v18, 0.0  ;;  %v3890_v63 = vld [vmem:[#allocation10 + $0x20] ss:$16 sps:$4 sm:$0xff]   ;;  %v3857_v14 = vld [vmem:[#allocation8 + $0x388] ss:$16 sps:$4 sm:$0xff]  }
 0x185   :  { %v3862_v15 = vld [vmem:[#allocation8 + $0x36c] ss:$16 sps:$4 sm:$0xff]   ;;  %v3899_v16 = vld [vmem:[#allocation10 + $0x1c0] ss:$16 sps:$4 sm:$0xff]   ;;  %v3860_v4 = vld [vmem:[#allocation8 + $0x368] ss:$16 sps:$4 sm:$0xff]  }
 0x186   :  { %v1077_v22 = vadd.f32 %v1076_v21, %v1034_v19  ;;  %1996 = vmatpush2.bf16.msra.mxu0 %v3815_v17  ;;  %v1085_v24 = vmax.f32 %v1075_v11, 0.0  ;;  %v3904_v17 = vld [vmem:[#allocation10 + $0x1a4] ss:$16 sps:$4 sm:$0xff]   ;;  %v3902_v18 = vld [vmem:[#allocation10 + $0x1a0] ss:$16 sps:$4 sm:$0xff]  }
 0x187   :  { %1997 = vmatprep.subr.bf16.mxu0 %v3823_v5  ;;  %v3865_v5 = vld [vmem:[#allocation8 + $0x34c] ss:$16 sps:$4 sm:$0xff]   ;;  %v3907_v11 = vld [vmem:[#allocation10 + $0x184] ss:$16 sps:$4 sm:$0xff]   ;;  %v3863_v19 = vld [vmem:[#allocation8 + $0x348] ss:$16 sps:$4 sm:$0xff]  }
 0x188   :  { %v1086_v26 = vmax.f32 %v1077_v22, 0.0  ;;  %v4308_v30 = vpack.c.bf16 %v1085_v24, %v1081_v27  ;;  %v3868_v20 = vld [vmem:[#allocation8 + $0x32c] ss:$16 sps:$4 sm:$0xff]   ;;  %v3905_v21 = vld [vmem:[#allocation10 + $0x180] ss:$16 sps:$4 sm:$0xff]  }
 0x189   :  { %v3910_v22 = vld [vmem:[#allocation10 + $0x164] ss:$16 sps:$4 sm:$0xff]   ;;  %v3871_v24 = vld [vmem:[#allocation8 + $0x30c] ss:$16 sps:$4 sm:$0xff]  }
 0x18a   :  { %v1090_v28 = vpack.c.bf16 %v1086_v26, %v1082_v25  ;;  %1998 = vmatpush2.bf16.msra.mxu0 %v3821_v23  ;;  %v3866_v23 = vld [vmem:[#allocation8 + $0x328] ss:$16 sps:$4 sm:$0xff]   ;;  %v3908_v25 = vld [vmem:[#allocation10 + $0x160] ss:$16 sps:$4 sm:$0xff]   ;;  %v3913_v27 = vld [vmem:[#allocation10 + $0x144] ss:$16 sps:$4 sm:$0xff]  }
 0x18b   :  { %2855 = vmatprep.subr.bf16.mxu0 %v3874_v38  ;;  %v3869_v26 = vld [vmem:[#allocation8 + $0x308] ss:$16 sps:$4 sm:$0xff]   ;;  %v3926_v38 = vld [vmem:[#allocation10 + $0x2c0] ss:$16 sps:$4 sm:$0xff]  }
 0x18c   :  { %1956 = vmatprep.mubr.bf16.mxu1 %v1090_v28 }
 0x18d   :  { %2000 = vmatmul.mubr.bf16.vlgmr.msra.gmra.mxu0 %v4295_v35  ;;  %1957 = vmatmul.mubr.bf16.vlgmr.msra.gmra.mxu1 %v4308_v30  ;;  %v3875_v35 = vld [vmem:[#allocation10 + $0xc0] ss:$16 sps:$4 sm:$0xff]  }
 0x18e   :  { %2011 = vmatpush1.bf16.msra.mxu1 %v3824_v29  ;;  %2042 = vmatprep.mubr.bf16.mxu1 %v1090_v28  ;;  %v3911_v28 = vld [vmem:[#allocation10 + $0x140] ss:$16 sps:$4 sm:$0xff]   ;;  %v3916_v29 = vld [vmem:[#allocation10 + $0x124] ss:$16 sps:$4 sm:$0xff]  }
 0x18f   :  { %2012 = vmatprep.subr.bf16.mxu1 %v3829_v31  ;;  %2856 = vmatpush1.bf16.msra.mxu0 %v3872_v37  ;;  %v3914_v31 = vld [vmem:[#allocation10 + $0x120] ss:$16 sps:$4 sm:$0xff]   ;;  %v3925_v37 = vld [vmem:[#allocation10 + $0xec] ss:$16 sps:$4 sm:$0xff]  }
 0x190   :  { %2857 = vmatprep.subr.bf16.mxu0 %v3877_v39  ;;  %v3932_v39 = vld [vmem:[#allocation10 + $0x2a0] ss:$16 sps:$4 sm:$0xff]  }
 0x192   :  { %2013 = vmatpush1.bf16.msra.mxu1 %v3827_v32  ;;  %v3919_v32 = vld [vmem:[#allocation10 + $0x104] ss:$16 sps:$4 sm:$0xff]  }
 0x193   :  { %2014 = vmatprep.subr.bf16.mxu1 %v3832_v33  ;;  %2858 = vmatpush1.bf16.msra.mxu0 %v3875_v35  ;;  %v3917_v33 = vld [vmem:[#allocation10 + $0x100] ss:$16 sps:$4 sm:$0xff]   ;;  %v3940_v35 = vld [vmem:[#allocation10 + $0x284] ss:$16 sps:$4 sm:$0xff]  }
 0x194   :  { %2859 = vmatprep.subr.bf16.mxu0 %v3880_v42  ;;  %v3944_v42 = vld [vmem:[#allocation10 + $0x260] ss:$16 sps:$4 sm:$0xff]  }
 0x196   :  { %2015 = vmatpush1.bf16.msra.mxu1 %v3830_v34  ;;  %v3920_v34 = vld [vmem:[#allocation10 + $0x2e0] ss:$16 sps:$4 sm:$0xff]  }
 0x197   :  { %2016 = vmatprep.subr.bf16.mxu1 %v3835_v36  ;;  %2860 = vmatpush1.bf16.msra.mxu0 %v3878_v45  ;;  %v3922_v36 = vld [vmem:[#allocation10 + $0x2e4] ss:$16 sps:$4 sm:$0xff]  }
 0x198   :  { %2861 = vmatprep.subr.bf16.mxu0 %v3883_v46  ;;  %v3952_v45 = vld [vmem:[#allocation10 + $0x244] ss:$16 sps:$4 sm:$0xff]   ;;  %v3956_v46 = vld [vmem:[#allocation10 + $0x220] ss:$16 sps:$4 sm:$0xff]  }
 0x19a   :  { %2017 = vmatpush1.bf16.msra.mxu1 %v3833_v40  ;;  %v3934_v40 = vld [vmem:[#allocation10 + $0x2a4] ss:$16 sps:$4 sm:$0xff]  }
 0x19b   :  { %2018 = vmatprep.subr.bf16.mxu1 %v3838_v41  ;;  %2862 = vmatpush1.bf16.msra.mxu0 %v3881_v49  ;;  %v3938_v41 = vld [vmem:[#allocation10 + $0x280] ss:$16 sps:$4 sm:$0xff]   ;;  %v3964_v49 = vld [vmem:[#allocation10 + $0x204] ss:$16 sps:$4 sm:$0xff]  }
 0x19c   :  { %2863 = vmatprep.subr.bf16.mxu0 %v3886_v50  ;;  %v3968_v50 = vld [vmem:[#allocation10 + $0x3e0] ss:$16 sps:$4 sm:$0xff]  }
 0x19e   :  { %2019 = vmatpush1.bf16.msra.mxu1 %v3836_v43  ;;  %v3946_v43 = vld [vmem:[#allocation10 + $0x264] ss:$16 sps:$4 sm:$0xff]  }
 0x19f   :  { %2020 = vmatprep.subr.bf16.mxu1 %v3841_v44  ;;  %2864 = vmatpush1.bf16.msra.mxu0 %v3884_v53  ;;  %v3950_v44 = vld [vmem:[#allocation10 + $0x240] ss:$16 sps:$4 sm:$0xff]   ;;  %v3976_v53 = vld [vmem:[#allocation10 + $0x3c4] ss:$16 sps:$4 sm:$0xff]  }
 0x1a0   :  { %2865 = vmatprep.subr.bf16.mxu0 %v3889_v54  ;;  %v3980_v54 = vld [vmem:[#allocation10 + $0x3a0] ss:$16 sps:$4 sm:$0xff]  }
 0x1a2   :  { %2021 = vmatpush1.bf16.msra.mxu1 %v3839_v47  ;;  %v3958_v47 = vld [vmem:[#allocation10 + $0x224] ss:$16 sps:$4 sm:$0xff]  }
 0x1a3   :  { %2022 = vmatprep.subr.bf16.mxu1 %v3844_v48  ;;  %2866 = vmatpush1.bf16.msra.mxu0 %v3887_v57  ;;  %v3962_v48 = vld [vmem:[#allocation10 + $0x200] ss:$16 sps:$4 sm:$0xff]   ;;  %v3988_v57 = vld [vmem:[#allocation10 + $0x384] ss:$16 sps:$4 sm:$0xff]  }
 0x1a4   :  { %2867 = vmatprep.subr.bf16.mxu0 %v3892_v58  ;;  %v3992_v58 = vld [vmem:[#allocation10 + $0x360] ss:$16 sps:$4 sm:$0xff]  }
 0x1a6   :  { %2023 = vmatpush1.bf16.msra.mxu1 %v3842_v51  ;;  %v3970_v51 = vld [vmem:[#allocation10 + $0x3e4] ss:$16 sps:$4 sm:$0xff]  }
 0x1a7   :  { %2024 = vmatprep.subr.bf16.mxu1 %v3847_v52  ;;  %2868 = vmatpush1.bf16.msra.mxu0 %v3890_v63  ;;  %v3974_v52 = vld [vmem:[#allocation10 + $0x3c0] ss:$16 sps:$4 sm:$0xff]  }
 0x1a8   :  { %2869 = vmatprep.subr.bf16.mxu0 %v3895_v0  ;;  %v3998_v63 = vld [vmem:[#allocation10 + $0x340] ss:$16 sps:$4 sm:$0xff]   ;;  %v4006_v0 = vld [vmem:[#allocation10 + $0x324] ss:$16 sps:$4 sm:$0xff]  }
 0x1aa   :  { %2025 = vmatpush1.bf16.msra.mxu1 %v3845_v55  ;;  %v3982_v55 = vld [vmem:[#allocation10 + $0x3a4] ss:$16 sps:$4 sm:$0xff]  }
 0x1ab   :  { %2026 = vmatprep.subr.bf16.mxu1 %v3850_v56  ;;  %2870 = vmatpush1.bf16.msra.mxu0 %v3893_v3  ;;  %v3986_v56 = vld [vmem:[#allocation10 + $0x380] ss:$16 sps:$4 sm:$0xff]  }
 0x1ac   :  { %2871 = vmatprep.subr.bf16.mxu0 %v3898_v6  ;;  %v4010_v3 = vld [vmem:[#allocation10 + $0x300] ss:$16 sps:$4 sm:$0xff]   ;;  %v4018_v6 = vld [vmem:[#allocation10 + $0x2ec] ss:$16 sps:$4 sm:$0xff]  }
 0x1ae   :  { %2027 = vmatpush2.bf16.msra.mxu1 %v3848_v61  ;;  %v3994_v61 = vld [vmem:[#allocation10 + $0x364] ss:$16 sps:$4 sm:$0xff]  }
 0x1af   :  { %2028 = vmatprep.subr.bf16.mxu1 %v3853_v62  ;;  %2872 = vmatpush2.bf16.msra.mxu0 %v3896_v9  ;;  %v4000_v62 = vld [vmem:[#allocation10 + $0x344] ss:$16 sps:$4 sm:$0xff]   ;;  %v4316_v9 = vld [vmem:[%s4348_s4] sm:$0xf] }
 0x1b0   :  { %2873 = vmatprep.subr.bf16.mxu0 %v3901_v13 }
 0x1b2   :  { %2029 = vmatpush2.bf16.msra.mxu1 %v3851_v1  ;;  %v4004_v1 = vld [vmem:[#allocation10 + $0x320] ss:$16 sps:$4 sm:$0xff]  }
 0x1b3   :  { %2030 = vmatprep.subr.bf16.mxu1 %v3856_v2  ;;  %2874 = vmatpush2.bf16.msra.mxu0 %v3899_v16  ;;  %v4012_v2 = vld [vmem:[#allocation10 + $0x304] ss:$16 sps:$4 sm:$0xff]  }
 0x1b4   :  { %2875 = vmatprep.subr.bf16.mxu0 %v3904_v17 }
 0x1b6   :  { %2031 = vmatpush2.bf16.msra.mxu1 %v3854_v7 }
 0x1b7   :  { %2032 = vmatprep.subr.bf16.mxu1 %v3859_v8  ;;  %2876 = vmatpush2.bf16.msra.mxu0 %v3902_v18 }
 0x1b8   :  { %2877 = vmatprep.subr.bf16.mxu0 %v3907_v11 }
 0x1ba   :  { %2033 = vmatpush2.bf16.msra.mxu1 %v3857_v14  ;;  %v1228_v14 = vrot.slane %v4316_v9, %v4284_v10 }
 0x1bb   :  { %2034 = vmatprep.subr.bf16.mxu1 %v3862_v15  ;;  %2878 = vmatpush2.bf16.msra.mxu0 %v3905_v21  ;;  %v1224_v15 = vrot.slane %v4316_v9, %v4289_v12 }
 0x1bc   :  { %2879 = vmatprep.subr.bf16.mxu0 %v3910_v22 }
 0x1be   :  { %2035 = vmatpush2.bf16.msra.mxu1 %v3860_v4 }
 0x1bf   :  { %2036 = vmatprep.subr.bf16.mxu1 %v3865_v5  ;;  %2880 = vmatpush2.bf16.msra.mxu0 %v3908_v25 }
 0x1c0   :  { %2881 = vmatprep.subr.bf16.mxu0 %v3913_v27 }
 0x1c2   :  { %2037 = vmatpush2.bf16.msra.mxu1 %v3863_v19 }
 0x1c3   :  { %2038 = vmatprep.subr.bf16.mxu1 %v3868_v20  ;;  %2882 = vmatpush2.bf16.msra.mxu0 %v3911_v28 }
 0x1c4   :  { %2883 = vmatprep.subr.bf16.mxu0 %v3916_v29 }
 0x1c6   :  { %2039 = vmatpush2.bf16.msra.mxu1 %v3866_v23 }
 0x1c7   :  { %2040 = vmatprep.subr.bf16.mxu1 %v3871_v24  ;;  %2884 = vmatpush2.bf16.msra.mxu0 %v3914_v31 }
 0x1c8   :  { %2885 = vmatprep.subr.bf16.mxu0 %v3919_v32  ;;  %v3923_v32 = vld [vmem:[#allocation10 + $0xe8] ss:$16 sps:$4 sm:$0xff]  }
 0x1ca   :  { %2041 = vmatpush2.bf16.msra.mxu1 %v3869_v26 }
 0x1cb   :  { %2886 = vmatpush2.bf16.msra.mxu0 %v3917_v33  ;;  %2898 = vmatprep.subr.bf16.mxu1 %v3922_v36  ;;  %v3929_v36 = vld [vmem:[#allocation10 + $0xc8] ss:$16 sps:$4 sm:$0xff]  }
 0x1cc   :  { %2941 = vmatprep.subr.bf16.mxu0 %v3925_v37  ;;  %v3937_v37 = vld [vmem:[#allocation10 + $0xac] ss:$16 sps:$4 sm:$0xff]  }
 0x1cd   :  { %2043 = vmatmul.mubr.bf16.vlgmr.msra.gmra.mxu1 %v4308_v30  ;;  %v3928_v30 = vld [vmem:[#allocation10 + $0x2c4] ss:$16 sps:$4 sm:$0xff]  }
 0x1ce   :  { %2899 = vmatpush1.bf16.msra.mxu1 %v3920_v34  ;;  %v3931_v34 = vld [vmem:[#allocation10 + $0xcc] ss:$16 sps:$4 sm:$0xff]  }
 0x1cf   :  { %2900 = vmatprep.subr.bf16.mxu1 %v3928_v30  ;;  %v3943_v30 = vld [vmem:[#allocation10 + $0x8c] ss:$16 sps:$4 sm:$0xff]  }
 0x1d2   :  { %2901 = vmatpush1.bf16.msra.mxu1 %v3926_v38  ;;  %v3935_v38 = vld [vmem:[#allocation10 + $0xa8] ss:$16 sps:$4 sm:$0xff]  }
 0x1d3   :  { %2902 = vmatprep.subr.bf16.mxu1 %v3934_v40  ;;  %v3949_v40 = vld [vmem:[#allocation10 + $0x6c] ss:$16 sps:$4 sm:$0xff]  }
 0x1d6   :  { %2903 = vmatpush1.bf16.msra.mxu1 %v3932_v39  ;;  %v3941_v39 = vld [vmem:[#allocation10 + $0x88] ss:$16 sps:$4 sm:$0xff]  }
 0x1d7   :  { %2904 = vmatprep.subr.bf16.mxu1 %v3940_v35  ;;  %v3955_v35 = vld [vmem:[#allocation10 + $0x4c] ss:$16 sps:$4 sm:$0xff]  }
 0x1da   :  { %2905 = vmatpush1.bf16.msra.mxu1 %v3938_v41  ;;  %v3947_v41 = vld [vmem:[#allocation10 + $0x68] ss:$16 sps:$4 sm:$0xff]  }
 0x1db   :  { %2906 = vmatprep.subr.bf16.mxu1 %v3946_v43  ;;  %v3961_v43 = vld [vmem:[#allocation10 + $0x2c] ss:$16 sps:$4 sm:$0xff]  }
 0x1de   :  { %2907 = vmatpush1.bf16.msra.mxu1 %v3944_v42  ;;  %v3953_v42 = vld [vmem:[#allocation10 + $0x48] ss:$16 sps:$4 sm:$0xff]  }
 0x1df   :  { %2908 = vmatprep.subr.bf16.mxu1 %v3952_v45  ;;  %v3967_v45 = vld [vmem:[#allocation10 + $0xc] ss:$16 sps:$4 sm:$0xff]  }
 0x1e2   :  { %2909 = vmatpush1.bf16.msra.mxu1 %v3950_v44  ;;  %v3959_v44 = vld [vmem:[#allocation10 + $0x28] ss:$16 sps:$4 sm:$0xff]  }
 0x1e3   :  { %2910 = vmatprep.subr.bf16.mxu1 %v3958_v47  ;;  %v3973_v47 = vld [vmem:[#allocation10 + $0x1ec] ss:$16 sps:$4 sm:$0xff]  }
 0x1e6   :  { %2911 = vmatpush1.bf16.msra.mxu1 %v3956_v46  ;;  %v3965_v46 = vld [vmem:[#allocation10 + $0x8] ss:$16 sps:$4 sm:$0xff]  }
 0x1e7   :  { %2912 = vmatprep.subr.bf16.mxu1 %v3964_v49  ;;  %v3979_v49 = vld [vmem:[#allocation10 + $0x1cc] ss:$16 sps:$4 sm:$0xff]  }
 0x1ea   :  { %2913 = vmatpush1.bf16.msra.mxu1 %v3962_v48  ;;  %v3971_v48 = vld [vmem:[#allocation10 + $0x1e8] ss:$16 sps:$4 sm:$0xff]  }
 0x1eb   :  { %2914 = vmatprep.subr.bf16.mxu1 %v3970_v51  ;;  %v3985_v51 = vld [vmem:[#allocation10 + $0x1ac] ss:$16 sps:$4 sm:$0xff]  }
 0x1ee   :  { %2915 = vmatpush2.bf16.msra.mxu1 %v3968_v50  ;;  %v3977_v50 = vld [vmem:[#allocation10 + $0x1c8] ss:$16 sps:$4 sm:$0xff]  }
 0x1ef   :  { %2916 = vmatprep.subr.bf16.mxu1 %v3976_v53  ;;  %v3991_v53 = vld [vmem:[#allocation10 + $0x18c] ss:$16 sps:$4 sm:$0xff]  }
 0x1f2   :  { %2917 = vmatpush2.bf16.msra.mxu1 %v3974_v52  ;;  %v3983_v52 = vld [vmem:[#allocation10 + $0x1a8] ss:$16 sps:$4 sm:$0xff]  }
 0x1f3   :  { %2918 = vmatprep.subr.bf16.mxu1 %v3982_v55  ;;  %v3989_v55 = vld [vmem:[#allocation10 + $0x188] ss:$16 sps:$4 sm:$0xff]  }
 0x1f6   :  { %2919 = vmatpush2.bf16.msra.mxu1 %v3980_v54 }
 0x1f7   :  { %2920 = vmatprep.subr.bf16.mxu1 %v3988_v57 }
 0x1fa   :  { %2921 = vmatpush2.bf16.msra.mxu1 %v3986_v56  ;;  %v3997_v56 = vld [vmem:[#allocation10 + $0x16c] ss:$16 sps:$4 sm:$0xff]  }
 0x1fb   :  { %2922 = vmatprep.subr.bf16.mxu1 %v3994_v61  ;;  %v4003_v61 = vld [vmem:[#allocation10 + $0x14c] ss:$16 sps:$4 sm:$0xff]  }
 0x1fe   :  { %2923 = vmatpush2.bf16.msra.mxu1 %v3992_v58  ;;  %v3995_v58 = vld [vmem:[#allocation10 + $0x168] ss:$16 sps:$4 sm:$0xff]  }
 0x1ff   :  { %2924 = vmatprep.subr.bf16.mxu1 %v4000_v62 }
 0x202   :  { %2925 = vmatpush2.bf16.msra.mxu1 %v3998_v63  ;;  %v1236_v63 = vrot.slane %v4316_v9, %v4299_v59 }
 0x203   :  { %2926 = vmatprep.subr.bf16.mxu1 %v4006_v0  ;;  %v4001_v0 = vld [vmem:[#allocation10 + $0x148] ss:$16 sps:$4 sm:$0xff]  }
 0x206   :  { %2927 = vmatpush2.bf16.msra.mxu1 %v4004_v1  ;;  %v1232_v1 = vrot.slane %v4316_v9, %v4302_v60  ;;  %v4013_v9 = vld [vmem:[#allocation10 + $0x108] ss:$16 sps:$4 sm:$0xff]  }
 0x207   :  { %2928 = vmatprep.subr.bf16.mxu1 %v4012_v2 }
 0x20a   :  { %2929 = vmatpush2.bf16.msra.mxu1 %v4010_v3  ;;  %v4009_v3 = vld [vmem:[#allocation10 + $0x12c] ss:$16 sps:$4 sm:$0xff]  }
 0x20b   :  { %2984 = vmatprep.subr.bf16.mxu1 %v4018_v6 }
 0x20d   :  { %v1915_v7 = vpop.f32.mrf.mxu0 }
 0x20e   :  { %v1916_v11 = vadd.f32 %v1915_v7, %v1224_v15 }
 0x20f   :  { %v1917_v8 = vpop.f32.mrf.mxu0 }
 0x210   :  { %v1918_v5 = vadd.f32 %v1917_v8, %v1228_v14 }
 0x211   :  { %v1919_v13 = vpop.f32.mrf.mxu0 }
 0x212   :  { %v1920_v18 = vadd.f32 %v1919_v13, %v1224_v15 }
 0x213   :  { %v1921_v17 = vpop.f32.mrf.mxu0 }
 0x214   :  { %v1922_v20 = vadd.f32 %v1921_v17, %v1228_v14  ;;  %v4007_v14 = vld [vmem:[#allocation10 + $0x128] ss:$16 sps:$4 sm:$0xff]   ;;  %v4015_v17 = vld [vmem:[#allocation10 + $0x10c] ss:$16 sps:$4 sm:$0xff]  }
 0x24d   :  { %v1958_v16 = vpop.f32.mrf.mxu1  ;;  %v2001_v54 = vpop.f32.mrf.mxu0 }
 0x24e   :  { %v1959_v23 = vadd.f32 %v1958_v16, %v1916_v11  ;;  %v2002_v15 = vadd.f32 %v2001_v54, %v1232_v1  ;;  %v4060_v54 = vld [vmem:[#allocation10 + $0x32c] ss:$16 sps:$4 sm:$0xff]  }
 0x24f   :  { %v1960_v4 = vpop.f32.mrf.mxu1  ;;  %v2003_v57 = vpop.f32.mrf.mxu0 }
 0x250   :  { %v1961_v21 = vadd.f32 %v1960_v4, %v1918_v5  ;;  %v2053_v29 = vmax.f32 %v1959_v23, 0.0  ;;  %v2004_v8 = vadd.f32 %v2003_v57, %v1236_v63  ;;  %v4061_v57 = vld [vmem:[#allocation10 + $0x308] ss:$16 sps:$4 sm:$0xff]  }
 0x251   :  { %v1962_v19 = vpop.f32.mrf.mxu1  ;;  %v2005_v62 = vpop.f32.mrf.mxu0 }
 0x252   :  { %v1963_v22 = vadd.f32 %v1962_v19, %v1920_v18  ;;  %v2054_v27 = vmax.f32 %v1961_v21, 0.0  ;;  %v2006_v13 = vadd.f32 %v2005_v62, %v1232_v1 }
 0x253   :  { %v1964_v24 = vpop.f32.mrf.mxu1  ;;  %v2007_v6 = vpop.f32.mrf.mxu0 }
 0x254   :  { %v1965_v25 = vadd.f32 %v1964_v24, %v1922_v20  ;;  %v2057_v26 = vmax.f32 %v1963_v22, 0.0  ;;  %v2008_v4 = vadd.f32 %v2007_v6, %v1236_v63 }
 0x256   :  { %v2058_v28 = vmax.f32 %v1965_v25, 0.0  ;;  %v4322_v33 = vpack.c.bf16 %v2057_v26, %v2053_v29  ;;  %v4016_v26 = vld [vmem:[#allocation10 + $0x2e8] ss:$16 sps:$4 sm:$0xff]  }
 0x257   :  { %v4019_v29 = vld [vmem:[#allocation10 + $0x2c8] ss:$16 sps:$4 sm:$0xff]  }
 0x258   :  { %v2062_v31 = vpack.c.bf16 %v2058_v28, %v2054_v27  ;;  %v4021_v28 = vld [vmem:[#allocation10 + $0x2cc] ss:$16 sps:$4 sm:$0xff]  }
 0x25a   :  { %2887 = vmatprep.mubr.bf16.mxu0 %v2062_v31 }
 0x25b   :  { %2888 = vmatmul.mubr.bf16.vlgmr.msra.gmra.mxu0 %v4322_v33 }
 0x25c   :  { %2942 = vmatpush1.bf16.msra.mxu0 %v3923_v32  ;;  %2973 = vmatprep.mubr.bf16.mxu0 %v2062_v31  ;;  %v4024_v31 = vld [vmem:[#allocation10 + $0x2ac] ss:$16 sps:$4 sm:$0xff]   ;;  %v4022_v32 = vld [vmem:[#allocation10 + $0x2a8] ss:$16 sps:$4 sm:$0xff]  }
 0x25d   :  { %2943 = vmatprep.subr.bf16.mxu0 %v3931_v34  ;;  %v4027_v34 = vld [vmem:[#allocation10 + $0x28c] ss:$16 sps:$4 sm:$0xff]  }
 0x260   :  { %2944 = vmatpush1.bf16.msra.mxu0 %v3929_v36  ;;  %v4025_v36 = vld [vmem:[#allocation10 + $0x288] ss:$16 sps:$4 sm:$0xff]  }
 0x261   :  { %2945 = vmatprep.subr.bf16.mxu0 %v3937_v37  ;;  %v4030_v37 = vld [vmem:[#allocation10 + $0x26c] ss:$16 sps:$4 sm:$0xff]  }
 0x264   :  { %2946 = vmatpush1.bf16.msra.mxu0 %v3935_v38  ;;  %v4028_v38 = vld [vmem:[#allocation10 + $0x268] ss:$16 sps:$4 sm:$0xff]  }
 0x265   :  { %2947 = vmatprep.subr.bf16.mxu0 %v3943_v30  ;;  %v4033_v30 = vld [vmem:[#allocation10 + $0x24c] ss:$16 sps:$4 sm:$0xff]  }
 0x268   :  { %2948 = vmatpush1.bf16.msra.mxu0 %v3941_v39  ;;  %v4031_v39 = vld [vmem:[#allocation10 + $0x248] ss:$16 sps:$4 sm:$0xff]  }
 0x269   :  { %2949 = vmatprep.subr.bf16.mxu0 %v3949_v40  ;;  %v4034_v40 = vld [vmem:[#allocation10 + $0x228] ss:$16 sps:$4 sm:$0xff]  }
 0x26c   :  { %2950 = vmatpush1.bf16.msra.mxu0 %v3947_v41  ;;  %v4039_v41 = vld [vmem:[#allocation10 + $0x20c] ss:$16 sps:$4 sm:$0xff]  }
 0x26d   :  { %2951 = vmatprep.subr.bf16.mxu0 %v3955_v35  ;;  %v4037_v35 = vld [vmem:[#allocation10 + $0x208] ss:$16 sps:$4 sm:$0xff]  }
 0x270   :  { %2952 = vmatpush1.bf16.msra.mxu0 %v3953_v42  ;;  %v4042_v42 = vld [vmem:[#allocation10 + $0x3ec] ss:$16 sps:$4 sm:$0xff]  }
 0x271   :  { %2953 = vmatprep.subr.bf16.mxu0 %v3961_v43  ;;  %v4040_v43 = vld [vmem:[#allocation10 + $0x3e8] ss:$16 sps:$4 sm:$0xff]  }
 0x274   :  { %2954 = vmatpush1.bf16.msra.mxu0 %v3959_v44  ;;  %v4045_v44 = vld [vmem:[#allocation10 + $0x3cc] ss:$16 sps:$4 sm:$0xff]  }
 0x275   :  { %2955 = vmatprep.subr.bf16.mxu0 %v3967_v45  ;;  %v4043_v45 = vld [vmem:[#allocation10 + $0x3c8] ss:$16 sps:$4 sm:$0xff]  }
 0x278   :  { %2956 = vmatpush1.bf16.msra.mxu0 %v3965_v46  ;;  %v4048_v46 = vld [vmem:[#allocation10 + $0x3ac] ss:$16 sps:$4 sm:$0xff]  }
 0x279   :  { %2957 = vmatprep.subr.bf16.mxu0 %v3973_v47  ;;  %v4046_v47 = vld [vmem:[#allocation10 + $0x3a8] ss:$16 sps:$4 sm:$0xff]  }
 0x27c   :  { %2958 = vmatpush2.bf16.msra.mxu0 %v3971_v48  ;;  %v4051_v48 = vld [vmem:[#allocation10 + $0x38c] ss:$16 sps:$4 sm:$0xff]  }
 0x27d   :  { %2959 = vmatprep.subr.bf16.mxu0 %v3979_v49  ;;  %v4049_v49 = vld [vmem:[#allocation10 + $0x388] ss:$16 sps:$4 sm:$0xff]  }
 0x280   :  { %2960 = vmatpush2.bf16.msra.mxu0 %v3977_v50  ;;  %v4054_v50 = vld [vmem:[#allocation10 + $0x36c] ss:$16 sps:$4 sm:$0xff]  }
 0x281   :  { %2961 = vmatprep.subr.bf16.mxu0 %v3985_v51  ;;  %v4052_v51 = vld [vmem:[#allocation10 + $0x368] ss:$16 sps:$4 sm:$0xff]  }
 0x284   :  { %2962 = vmatpush2.bf16.msra.mxu0 %v3983_v52  ;;  %v4057_v52 = vld [vmem:[#allocation10 + $0x34c] ss:$16 sps:$4 sm:$0xff]  }
 0x285   :  { %2963 = vmatprep.subr.bf16.mxu0 %v3991_v53  ;;  %v4055_v53 = vld [vmem:[#allocation10 + $0x348] ss:$16 sps:$4 sm:$0xff]  }
 0x288   :  { %2964 = vmatpush2.bf16.msra.mxu0 %v3989_v55  ;;  %v4058_v55 = vld [vmem:[#allocation10 + $0x328] ss:$16 sps:$4 sm:$0xff]  }
 0x289   :  { %2965 = vmatprep.subr.bf16.mxu0 %v3997_v56  ;;  %v4063_v56 = vld [vmem:[#allocation10 + $0x30c] ss:$16 sps:$4 sm:$0xff]  }
 0x28c   :  { %2966 = vmatpush2.bf16.msra.mxu0 %v3995_v58 }
 0x28d   :  { %v2044_v2 = vpop.f32.mrf.mxu1  ;;  %2967 = vmatprep.subr.bf16.mxu0 %v4003_v61 }
 0x28e   :  { %v2045_v11 = vadd.f32 %v2044_v2, %v2002_v15 }
 0x28f   :  { %v2046_v7 = vpop.f32.mrf.mxu1 }
 0x290   :  { %2968 = vmatpush2.bf16.msra.mxu0 %v4001_v0  ;;  %v2047_v5 = vadd.f32 %v2046_v7, %v2004_v8  ;;  %v2055_v24 = vmax.f32 %v2045_v11, 0.0  ;;  %v2193_v0 = vld [vmem:[%s4350_s6] sm:$0xf]  ;;  %s4203_s6 = smov [#allocation11]  }
 0x291   :  { %v2048_v16 = vpop.f32.mrf.mxu1  ;;  %2969 = vmatprep.subr.bf16.mxu0 %v4009_v3  ;;  %v2202_v3 = vrot.slane %v2193_v0, %v4284_v10  ;;  %v2198_v7 = vrot.slane %v2193_v0, %v4289_v12  ;;  %v2210_v11 = vrot.slane %v2193_v0, %v4299_v59  ;;  %s3070_s26 = sshll.u32 %s4203_s6, 4  ;;  %s3071_s26 = int_to_ptr.vmem [resolvable:$true] %s3070_s26 }
 0x292   :  { %v2049_v18 = vadd.f32 %v2048_v16, %v2006_v13  ;;  %v2056_v22 = vmax.f32 %v2047_v5, 0.0  ;;  %v2206_v16 = vrot.slane %v2193_v0, %v4302_v60  ;;  %s4168_s27 = scalar_lea.vmem %s3071_s26, 1024  ;;  %p4173_p12 = scmp.lt.s32.totalorder %s3071_s26, %s3071_s26 }
 0x293   :  { %v2050_v19 = vpop.f32.mrf.mxu1  ;;  %p4169_p11 = scmp.ne.s32.totalorder %s3071_s26, %s4168_s27  ;;  %p4174_p13 = scmp.lt.s32.totalorder %s4168_s27, %s4168_s27 }
 0x294   :  { %v2051_v20 = vadd.f32 %v2050_v19, %v2008_v4  ;;  %2970 = vmatpush2.bf16.msra.mxu0 %v4007_v14  ;;  %v2059_v21 = vmax.f32 %v2049_v18, 0.0 }
 0x295   :  { %2971 = vmatprep.subr.bf16.mxu0 %v4015_v17  ;;  %p4175_p0 = por %p4174_p13, %p4173_p12 }
 0x296   :  { %v2060_v23 = vmax.f32 %v2051_v20, 0.0  ;;  %v4329_v27 = vpack.c.bf16 %v2059_v21, %v2055_v24 }
 0x297   :  { %p4176_p1 = pnand %p4175_p0, %p4169_p11 }
 0x298   :  { %v2064_v25 = vpack.c.bf16 %v2060_v23, %v2056_v22  ;;  %2972 = vmatpush2.bf16.msra.mxu0 %v4013_v9 }
 0x29a   :  { %2930 = vmatprep.mubr.bf16.mxu1 %v2064_v25 }
 0x29b   :  { %2931 = vmatmul.mubr.bf16.vlgmr.msra.gmra.mxu1 %v4329_v27  ;;  %2974 = vmatmul.mubr.bf16.vlgmr.msra.gmra.mxu0 %v4322_v33  ;;  %v4036_v33 = vld [vmem:[#allocation10 + $0x22c] ss:$16 sps:$4 sm:$0xff]  }
 0x29c   :  { %2985 = vmatpush1.bf16.msra.mxu1 %v4016_v26  ;;  %3016 = vmatprep.mubr.bf16.mxu1 %v2064_v25 }
 0x29d   :  { %2986 = vmatprep.subr.bf16.mxu1 %v4021_v28 }
 0x2a0   :  { %2987 = vmatpush1.bf16.msra.mxu1 %v4019_v29 }
 0x2a1   :  { %2988 = vmatprep.subr.bf16.mxu1 %v4024_v31 }
 0x2a4   :  { %2989 = vmatpush1.bf16.msra.mxu1 %v4022_v32 }
 0x2a5   :  { %2990 = vmatprep.subr.bf16.mxu1 %v4027_v34 }
 0x2a8   :  { %2991 = vmatpush1.bf16.msra.mxu1 %v4025_v36 }
 0x2a9   :  { %2992 = vmatprep.subr.bf16.mxu1 %v4030_v37 }
 0x2ac   :  { %2993 = vmatpush1.bf16.msra.mxu1 %v4028_v38 }
 0x2ad   :  { %2994 = vmatprep.subr.bf16.mxu1 %v4033_v30 }
 0x2b0   :  { %2995 = vmatpush1.bf16.msra.mxu1 %v4031_v39 }
 0x2b1   :  { %2996 = vmatprep.subr.bf16.mxu1 %v4036_v33 }
 0x2b4   :  { %2997 = vmatpush1.bf16.msra.mxu1 %v4034_v40 }
 0x2b5   :  { %2998 = vmatprep.subr.bf16.mxu1 %v4039_v41 }
 0x2b8   :  { %2999 = vmatpush1.bf16.msra.mxu1 %v4037_v35 }
 0x2b9   :  { %3000 = vmatprep.subr.bf16.mxu1 %v4042_v42 }
 0x2bc   :  { %3001 = vmatpush2.bf16.msra.mxu1 %v4040_v43 }
 0x2bd   :  { %3002 = vmatprep.subr.bf16.mxu1 %v4045_v44 }
 0x2c0   :  { %3003 = vmatpush2.bf16.msra.mxu1 %v4043_v45 }
 0x2c1   :  { %3004 = vmatprep.subr.bf16.mxu1 %v4048_v46 }
 0x2c4   :  { %3005 = vmatpush2.bf16.msra.mxu1 %v4046_v47 }
 0x2c5   :  { %3006 = vmatprep.subr.bf16.mxu1 %v4051_v48 }
 0x2c8   :  { %3007 = vmatpush2.bf16.msra.mxu1 %v4049_v49 }
 0x2c9   :  { %3008 = vmatprep.subr.bf16.mxu1 %v4054_v50 }
 0x2cc   :  { %3009 = vmatpush2.bf16.msra.mxu1 %v4052_v51 }
 0x2cd   :  { %3010 = vmatprep.subr.bf16.mxu1 %v4057_v52 }
 0x2d0   :  { %3011 = vmatpush2.bf16.msra.mxu1 %v4055_v53 }
 0x2d1   :  { %3012 = vmatprep.subr.bf16.mxu1 %v4060_v54 }
 0x2d4   :  { %3013 = vmatpush2.bf16.msra.mxu1 %v4058_v55 }
 0x2d5   :  { %3014 = vmatprep.subr.bf16.mxu1 %v4063_v56 }
 0x2d8   :  { %3015 = vmatpush2.bf16.msra.mxu1 %v4061_v57 }
 0x2db   :  { %3017 = vmatmul.mubr.bf16.vlgmr.msra.gmra.mxu1 %v4329_v27 }
 0x31b   :  { %v2889_v58 = vpop.f32.mrf.mxu0 }
 0x31c   :  { %v2890_v15 = vadd.f32 %v2889_v58, %v2198_v7 }
 0x31d   :  { %v2891_v61 = vpop.f32.mrf.mxu0 }
 0x31e   :  { %v2892_v13 = vadd.f32 %v2891_v61, %v2202_v3 }
 0x31f   :  { %v2893_v62 = vpop.f32.mrf.mxu0 }
 0x320   :  { %v2894_v19 = vadd.f32 %v2893_v62, %v2198_v7 }
 0x321   :  { %v2895_v1 = vpop.f32.mrf.mxu0 }
 0x322   :  { %v2896_v5 = vadd.f32 %v2895_v1, %v2202_v3 }
 0x35b   :  { %v2932_v63 = vpop.f32.mrf.mxu1  ;;  %v2975_v6 = vpop.f32.mrf.mxu0 }
 0x35c   :  { %v2933_v18 = vadd.f32 %v2932_v63, %v2890_v15  ;;  %v2976_v9 = vadd.f32 %v2975_v6, %v2206_v16 }
 0x35d   :  { %v2934_v2 = vpop.f32.mrf.mxu1  ;;  %v2977_v14 = vpop.f32.mrf.mxu0 }
 0x35e   :  { %v2935_v17 = vadd.f32 %v2934_v2, %v2892_v13  ;;  %v3027_v12 = vmul.f32 %v2933_v18, %v2933_v18  ;;  %v2978_v24 = vadd.f32 %v2977_v14, %v2210_v11 }
 0x35f   :  { %v2936_v8 = vpop.f32.mrf.mxu1  ;;  %v2979_v20 = vpop.f32.mrf.mxu0 }
 0x360   :  { %v3028_v21 = vmul.f32 %v2935_v17, %v2935_v17  ;;  %v2937_v22 = vadd.f32 %v2936_v8, %v2894_v19  ;;  %v2980_v26 = vadd.f32 %v2979_v20, %v2206_v16 }
 0x361   :  { %v2938_v4 = vpop.f32.mrf.mxu1  ;;  %v2981_v27 = vpop.f32.mrf.mxu0 }
 0x362   :  { %v2939_v10 = vadd.f32 %v2938_v4, %v2896_v5  ;;  %v3035_v32 = vadd.f32 %v3028_v21, %v3027_v12  ;;  %v3031_v34 = vmul.f32 %v2937_v22, %v2937_v22  ;;  %v2982_v59 = vadd.f32 %v2981_v27, %v2210_v11 }
 0x364   :  { %v3032_v60 = vmul.f32 %v2939_v10, %v2939_v10 }
 0x366   :  { %v3040_v33 = vadd.f32 %v3032_v60, %v3031_v34 }
 0x39b   :  { %v3018_v23 = vpop.f32.mrf.mxu1 }
 0x39c   :  { %v3019_v25 = vadd.f32 %v3018_v23, %v2976_v9 }
 0x39d   :  { %v3020_v28 = vpop.f32.mrf.mxu1 }
 0x39e   :  { %v3029_v29 = vmul.f32 %v3019_v25, %v3019_v25  ;;  %v3021_v31 = vadd.f32 %v3020_v28, %v2978_v24 }
 0x39f   :  { %v3022_v36 = vpop.f32.mrf.mxu1 }
 0x3a0   :  { %v3023_v37 = vadd.f32 %v3022_v36, %v2980_v26  ;;  %v3030_v38 = vmul.f32 %v3021_v31, %v3021_v31  ;;  %v3036_v30 = vadd.f32 %v3035_v32, %v3029_v29 }
 0x3a1   :  { %v3024_v39 = vpop.f32.mrf.mxu1 }
 0x3a2   :  { %v3033_v40 = vmul.f32 %v3023_v37, %v3023_v37  ;;  %v3025_v41 = vadd.f32 %v3024_v39, %v2982_v59  ;;  %v3037_v35 = vadd.f32 %v3036_v30, %v3030_v38 }
 0x3a4   :  { %v3034_v42 = vmul.f32 %v3025_v41, %v3025_v41  ;;  %3038 = vadd.xlane.f32.xlu0 %v3037_v35  ;;  %v3041_v43 = vadd.f32 %v3040_v33, %v3033_v40 }
 0x3a6   :  { %v3042_v44 = vadd.f32 %v3041_v43, %v3034_v42 }
 0x3a8   :  { %3043 = vadd.xlane.f32.xlu0 %v3042_v44 }
 0x42d   :  { %v3039_v45 = vpop.xlane.xlu0 %3038 }
 0x42e   :  { %v3045_v46 = vmax.f32 %v3039_v45, 1e-24 }
 0x430   :  { %4064 = vrsqrt.f32 %v3045_v46 }
 0x431   :  { %v3044_v47 = vpop.xlane.xlu0 %3043 }
 0x432   :  { %v3046_v48 = vmax.f32 %v3044_v47, 1e-24 }
 0x434   :  { %4066 = vrsqrt.f32 %v3046_v48 }
 0x43d   :  { %v4065_v49 = vpop.eup %4064 }
 0x43e   :  { %v3049_v50 = vmul.f32 %v4065_v49, %v2933_v18  ;;  %v3050_v51 = vmul.f32 %v4065_v49, %v2935_v17  ;;  %v3051_v52 = vmul.f32 %v4065_v49, %v3019_v25  ;;  %v3052_v53 = vmul.f32 %v4065_v49, %v3021_v31 }
 0x440   :  { %3057 = vst [vmem:[#allocation11] sm:$0xff] %v3049_v50  ;;  %3058 = vst [vmem:[#allocation11 + $0x8] sm:$0xff] %v3050_v51 }
 0x441   :  { %3059 = vst [vmem:[#allocation11 + $0x10] sm:$0xff] %v3051_v52  ;;  %3060 = vst [vmem:[#allocation11 + $0x18] sm:$0xff] %v3052_v53  ;;  %v4067_v54 = vpop.eup %4066 }
 0x442   :  { %v3053_v55 = vmul.f32 %v4067_v54, %v2937_v22  ;;  %v3054_v56 = vmul.f32 %v4067_v54, %v2939_v10  ;;  %v3055_v57 = vmul.f32 %v4067_v54, %v3023_v37  ;;  %v3056_v58 = vmul.f32 %v4067_v54, %v3025_v41 }
 0x444   :  { %3061 = vst [vmem:[#allocation11 + $0x20] sm:$0xff] %v3053_v55  ;;  %3062 = vst [vmem:[#allocation11 + $0x28] sm:$0xff] %v3054_v56 }
 0x445   :  { %3063 = vst [vmem:[#allocation11 + $0x30] sm:$0xff] %v3055_v57  ;;  %3064 = vst [vmem:[#allocation11 + $0x38] sm:$0xff] %v3056_v58 }
 0x446   :  { %4179 = shalt.err (!%p4176_p1)
}
 0x447   :  { %s4204_s28 = smov 512   ;;  %s4205_s29 = smov 32  }
 0x448   :  { %3076 = dma.vmem_to_hbm [thread:$0]  %s3071_s26, 1024, %s4351_s7, [#allocation4], %s4204_s28, %s4204_s28, %s4205_s29  }
 0x449   :  { %4194 = dma.done.wait [#allocation4], 1024  }
 0x44a   :  { %4195 = vsyncadd [#allocation4], 4294966272 }
 0x44b   :  { %3080 = vsyncpa [#allocation3], 1 }
 0x44c   :  { %3081 = vsyncpa [#allocation6], 1 }
 0x44d   :  { %3082 = vsyncpa [#allocation9], 1 }
 0x44e   :  { %3083 = vsyncpa [#allocation4], 1 }

</bundles_post_ra>
